<compile_context>
chip_gen: v6e
topology: v6e:2x2x1
jax: 0.10.0
libtpu: 0.0.40
codegen_flags: <defaults>
</compile_context>

<pallas_src>
import jax
import jax.numpy as jnp
from jax.experimental import pallas as pl
from jax.experimental.pallas import tpu as pltpu

N = 16          # nodes per graph
D = 32          # dim_feat
H = 4           # num_heads
B = 8           # graphs per call (batch)
G = 4           # graphs per grid step (G * D == 128 -> lane-dense output block)
SLOPE = 0.2     # LeakyReLU negative slope
NEG = -1e30     # mask value for non-edges


def gat_kernel(feat_ref, adjt_ref, wfc_ref, watt_ref, wtr_ref, btr_ref, out_ref):
    feat = feat_ref[...]                                        # (G*N, D)
    # fc_n (no bias): (G*N, D) @ (D, H*D)
    hf = jnp.dot(feat, wfc_ref[...], preferred_element_type=jnp.float32)
    # All per-head attention logits in one MXU matmul against the
    # block-diagonal weight: att[:, h] = att_ns head h, att[:, H+h] = att_nd.
    att = jnp.dot(hf, watt_ref[...], preferred_element_type=jnp.float32)  # (G*N, 2H)
    attT = jnp.transpose(att)                                   # (2H, G*N) - one tiny transpose/step
    wtr = wtr_ref[...]                                          # (H*D, D)

    agg_rows = []
    for g in range(G):                                          # static unroll over graphs
        adjt = adjt_ref[g]                                      # (N_dst, N_src) = adj^T
        mask = adjt > 0.0
        hf_g = hf[g * N:(g + 1) * N, :]                         # (N, H*D) this graph's features
        agg_heads = []
        for h in range(H):                                      # static unroll over heads
            nd_col = att[g * N:(g + 1) * N, H + h:H + h + 1]    # (N_dst, 1)
            ns_row = attT[h:h + 1, g * N:(g + 1) * N]           # (1, N_src)
            # edge logit e[v, u] = att_ns[u] + att_nd[v], already (dst, src)
            s = nd_col + ns_row
            s = jnp.where(s >= 0.0, s, SLOPE * s)               # LeakyReLU(0.2)
            s = jnp.where(mask, s, NEG)
            # edge_softmax over incoming edges (src axis = lanes)
            m = jnp.max(s, axis=-1, keepdims=True)              # (N_dst, 1)
            # keep the mask select: needed for zero-in-degree dst nodes
            # (there m == NEG and exp(s - m) would be 1, not 0)
            e = jnp.where(mask, jnp.exp(s - m), 0.0)
            denom = jnp.sum(e, axis=-1, keepdims=True)
            a = e / jnp.maximum(denom, 1e-30)                   # (N_dst, N_src)
            # message passing: ft_dst = a @ ft_src  (no transpose needed)
            agg_heads.append(jnp.dot(a, hf_g[:, h * D:(h + 1) * D],
                                     preferred_element_type=jnp.float32))
        agg_rows.append(jnp.concatenate(agg_heads, axis=1))     # (N, H*D)

    agg = jnp.concatenate(agg_rows, axis=0)                     # (G*N, H*D)
    # single fused `trans` matmul, K = H*D = 128
    res = jnp.dot(agg, wtr, preferred_element_type=jnp.float32) + btr_ref[...]  # (G*N, D)
    # lane-dense (N, G*D = 128) output slab: graph g occupies lanes [g*D, (g+1)*D)
    out_ref[...] = jnp.concatenate(
        [res[g * N:(g + 1) * N, :] for g in range(G)], axis=1)


def gat_forward(feat, adj, w_fc, ans_w, and_w, w_tr, b_tr):
    """feat: (B, N, D) node features; adj: (B, N, N) with adj[b,u,v]=1 iff u->v."""
    assert feat.shape == (B, N, D) and adj.shape == (B, N, N) and B % G == 0
    # block-diagonal attention weight (H*D, 2H):
    #   column h     <- attention_ns for head h
    #   column H + h <- attention_nd for head h
    watt = jnp.zeros((H * D, 2 * H), jnp.float32)
    for h in range(H):
        watt = watt.at[h * D:(h + 1) * D, h].set(ans_w[h])
        watt = watt.at[h * D:(h + 1) * D, H + h].set(and_w[h])

    feat2 = feat.reshape(B * N, D)
    adj_t = jnp.swapaxes(adj, 1, 2)                              # (B, dst, src)

    out = pl.pallas_call(
        gat_kernel,
        out_shape=jax.ShapeDtypeStruct((N, B * D), jnp.float32),
        grid=(B // G,),
        in_specs=[
            pl.BlockSpec((G * N, D), lambda i: (i, 0)),          # per-step node rows
            pl.BlockSpec((G, N, N), lambda i: (i, 0, 0)),        # per-step adjacency^T
            pl.BlockSpec((D, H * D), lambda i: (0, 0)),          # weights: constant
            pl.BlockSpec((H * D, 2 * H), lambda i: (0, 0)),      #  index_maps -> stay
            pl.BlockSpec((H * D, D), lambda i: (0, 0)),          #  VMEM-resident
            pl.BlockSpec((1, D), lambda i: (0, 0)),
        ],
        out_specs=pl.BlockSpec((N, G * D), lambda i: (0, i)),    # lane-dense block
        compiler_params=pltpu.CompilerParams(
            dimension_semantics=("parallel",)),                  # v7x dual-TC sharding
    )(feat2, adj_t, w_fc, watt, w_tr, b_tr)

    # (N, B*D) lane-dense slab -> (B, N, D)
    return out.reshape(N, B, D).transpose(1, 0, 2)


def gat_reference(feat, adj, w_fc, ans_w, and_w, w_tr, b_tr):
    """Pure-JAX batched reference mirroring the PyTorch/DGL forward."""
    hf = feat @ w_fc                                             # (B, N, H*D)
    hf3 = hf.reshape(B, N, H, D)
    att_ns = jnp.sum(hf3 * ans_w[None, None], axis=-1)           # (B, N, H)
    att_nd = jnp.sum(hf3 * and_w[None, None], axis=-1)           # (B, N, H)
    scores = att_ns[:, :, None, :] + att_nd[:, None, :, :]       # (B, src, dst, H)
    scores = jnp.where(scores >= 0.0, scores, SLOPE * scores)
    mask = (adj > 0.0)[..., None]                                # (B, src, dst, 1)
    scores = jnp.where(mask, scores, NEG)
    m = jnp.max(scores, axis=1, keepdims=True)
    e = jnp.where(mask, jnp.exp(scores - m), 0.0)
    denom = jnp.sum(e, axis=1, keepdims=True)
    a = e / jnp.maximum(denom, 1e-30)
    agg = jnp.einsum('bsvh,bshd->bvhd', a, hf3)                  # (B, dst, H, D)
    return agg.reshape(B, N, H * D) @ w_tr + b_tr


def init_params(key):
    """Deterministic synthetic parameters (xavier-normal-ish, gain=sqrt(2))."""
    k1, k2, k3, k4, k5 = jax.random.split(key, 5)
    gain = jnp.sqrt(2.0)                                         # calculate_gain('relu')
    std_fc = gain * jnp.sqrt(2.0 / (D + H * D))
    w_fc = (jax.random.normal(k1, (H * D, D), jnp.float32) * std_fc).T   # (D, H*D)
    std_att = gain * jnp.sqrt(2.0 / (H * D + D))
    ans_w = jax.random.normal(k2, (H, D), jnp.float32) * std_att
    and_w = jax.random.normal(k3, (H, D), jnp.float32) * std_att
    std_tr = 1.0 / jnp.sqrt(float(H * D))
    w_tr = jax.random.normal(k4, (H * D, D), jnp.float32) * std_tr       # (H*D, D)
    b_tr = jax.random.normal(k5, (1, D), jnp.float32) * std_tr           # (1, D)
    return w_fc, ans_w, and_w, w_tr, b_tr


if __name__ == "__main__":
    key = jax.random.PRNGKey(0)
    k_feat, k_adj, k_par = jax.random.split(key, 3)

    feat = jax.random.normal(k_feat, (B, N, D), jnp.float32)
    # dense adjacency per graph: adj[b, u, v] = 1.0 iff edge u -> v
    adj = jax.random.bernoulli(k_adj, 0.4, (B, N, N)).astype(jnp.float32)
    w_fc, ans_w, and_w, w_tr, b_tr = init_params(k_par)

    out = gat_forward(feat, adj, w_fc, ans_w, and_w, w_tr, b_tr)
    out = jax.block_until_ready(out)

    ref = gat_reference(feat, adj, w_fc, ans_w, and_w, w_tr, b_tr)
    assert out.shape == (B, N, D)
    assert jnp.allclose(out, ref, atol=3e-4, rtol=3e-4), "mismatch vs reference"

    print("KERNEL_OK")
</pallas_src>

<mosaic_0001>
module attributes {stable_mosaic.version = 11 : i64} {
  func.func @gat_kernel(%arg0: i32, %arg1: memref<64x32xf32, #tpu.memory_space<vmem>>, %arg2: memref<4x16x16xf32, #tpu.memory_space<vmem>>, %arg3: memref<32x128xf32, #tpu.memory_space<vmem>>, %arg4: memref<128x8xf32, #tpu.memory_space<vmem>>, %arg5: memref<128x32xf32, #tpu.memory_space<vmem>>, %arg6: memref<1x32xf32, #tpu.memory_space<vmem>>, %arg7: memref<16x128xf32, #tpu.memory_space<vmem>>) attributes {dimension_semantics = [#tpu.dimension_semantics<parallel>], iteration_bounds = array<i64: 2>, scalar_prefetch = 0 : i64, scratch_operands = 0 : i64, tpu.core_type = #tpu.core_type<tc>, window_params = [{transform_indices = @transform_0, window_bounds = array<i64: 64, 32>}, {transform_indices = @transform_1, window_bounds = array<i64: 4, 16, 16>}, {pipeline_mode = #tpu.pipeline_mode<synchronous>, transform_indices = @transform_2, window_bounds = array<i64: 32, 128>}, {pipeline_mode = #tpu.pipeline_mode<synchronous>, transform_indices = @transform_3, window_bounds = array<i64: 128, 8>}, {pipeline_mode = #tpu.pipeline_mode<synchronous>, transform_indices = @transform_4, window_bounds = array<i64: 128, 32>}, {pipeline_mode = #tpu.pipeline_mode<synchronous>, transform_indices = @transform_5, window_bounds = array<i64: 1, 32>}, {transform_indices = @transform_6, window_bounds = array<i64: 16, 128>}]} {
    %c0 = arith.constant 0 : index
    %c0_0 = arith.constant 0 : index
    %0 = vector.load %arg1[%c0, %c0_0] : memref<64x32xf32, #tpu.memory_space<vmem>>, vector<64x32xf32>
    %c0_1 = arith.constant 0 : index
    %c0_2 = arith.constant 0 : index
    %1 = vector.load %arg3[%c0_1, %c0_2] : memref<32x128xf32, #tpu.memory_space<vmem>>, vector<32x128xf32>
    %cst = arith.constant dense<0.000000e+00> : vector<64x128xf32>
    %2 = tpu.matmul %0, %1, %cst {dimension_numbers = #tpu.dot_dimension_numbers<[1], [0], [0], [1], [0, 0, 1, 1], [], []>} : vector<64x32xf32>, vector<32x128xf32>, vector<64x128xf32> -> vector<64x128xf32>
    %c0_3 = arith.constant 0 : index
    %c0_4 = arith.constant 0 : index
    %3 = vector.load %arg4[%c0_3, %c0_4] : memref<128x8xf32, #tpu.memory_space<vmem>>, vector<128x8xf32>
    %cst_5 = arith.constant dense<0.000000e+00> : vector<64x8xf32>
    %4 = tpu.matmul %2, %3, %cst_5 {dimension_numbers = #tpu.dot_dimension_numbers<[1], [0], [0], [1], [0, 0, 1, 1], [], []>} : vector<64x128xf32>, vector<128x8xf32>, vector<64x8xf32> -> vector<64x8xf32>
    %5 = tpu.transpose %4, [1, 0] : vector<64x8xf32> -> vector<8x64xf32>
    %c0_6 = arith.constant 0 : index
    %c0_7 = arith.constant 0 : index
    %6 = vector.load %arg5[%c0_6, %c0_7] : memref<128x32xf32, #tpu.memory_space<vmem>>, vector<128x32xf32>
    %c0_8 = arith.constant 0 : index
    %c0_9 = arith.constant 0 : index
    %c0_10 = arith.constant 0 : index
    %7 = vector.load %arg2[%c0_8, %c0_9, %c0_10] : memref<4x16x16xf32, #tpu.memory_space<vmem>>, vector<1x16x16xf32>
    %8 = vector.shape_cast %7 : vector<1x16x16xf32> to vector<16x16xf32>
    %cst_11 = arith.constant 0.000000e+00 : f32
    %9 = vector.broadcast %cst_11 : f32 to vector<16x16xf32>
    %10 = arith.cmpf ogt, %8, %9 : vector<16x16xf32>
    %11 = vector.extract_strided_slice %2 {offsets = [0, 0], sizes = [16, 128], strides = [1, 1]} : vector<64x128xf32> to vector<16x128xf32>
    %12 = vector.extract_strided_slice %4 {offsets = [0, 4], sizes = [16, 1], strides = [1, 1]} : vector<64x8xf32> to vector<16x1xf32>
    %13 = vector.extract_strided_slice %5 {offsets = [0, 0], sizes = [1, 16], strides = [1, 1]} : vector<8x64xf32> to vector<1x16xf32>
    %14 = vector.broadcast %12 : vector<16x1xf32> to vector<16x16xf32>
    %15 = vector.broadcast %13 : vector<1x16xf32> to vector<16x16xf32>
    %16 = arith.addf %14, %15 : vector<16x16xf32>
    %cst_12 = arith.constant 0.000000e+00 : f32
    %17 = vector.broadcast %cst_12 : f32 to vector<16x16xf32>
    %18 = arith.cmpf oge, %16, %17 : vector<16x16xf32>
    %cst_13 = arith.constant 2.000000e-01 : f32
    %19 = vector.broadcast %cst_13 : f32 to vector<16x16xf32>
    %20 = arith.mulf %19, %16 : vector<16x16xf32>
    %21 = arith.select %18, %16, %20 : vector<16x16xi1>, vector<16x16xf32>
    %cst_14 = arith.constant -1.000000e+30 : f32
    %22 = vector.broadcast %cst_14 : f32 to vector<16x16xf32>
    %23 = arith.select %10, %21, %22 : vector<16x16xi1>, vector<16x16xf32>
    %cst_15 = arith.constant dense<0xFF800000> : vector<16xf32>
    %24 = vector.multi_reduction <maximumf>, %23, %cst_15 [1] : vector<16x16xf32> to vector<16xf32>
    %25 = vector.shape_cast %24 : vector<16xf32> to vector<16x1xf32>
    %26 = vector.broadcast %25 : vector<16x1xf32> to vector<16x16xf32>
    %27 = arith.subf %23, %26 : vector<16x16xf32>
    %28 = math.exp %27 : vector<16x16xf32>
    %cst_16 = arith.constant 0.000000e+00 : f32
    %29 = vector.broadcast %cst_16 : f32 to vector<16x16xf32>
    %30 = arith.select %10, %28, %29 : vector<16x16xi1>, vector<16x16xf32>
    %cst_17 = arith.constant dense<0.000000e+00> : vector<16xf32>
    %31 = vector.multi_reduction <add>, %30, %cst_17 [1] : vector<16x16xf32> to vector<16xf32>
    %32 = vector.shape_cast %31 : vector<16xf32> to vector<16x1xf32>
    %cst_18 = arith.constant 1.000000e-30 : f32
    %33 = vector.broadcast %cst_18 : f32 to vector<16x1xf32>
    %34 = arith.maximumf %32, %33 : vector<16x1xf32>
    %35 = vector.broadcast %34 : vector<16x1xf32> to vector<16x16xf32>
    %36 = arith.divf %30, %35 : vector<16x16xf32>
    %37 = vector.extract_strided_slice %11 {offsets = [0, 0], sizes = [16, 32], strides = [1, 1]} : vector<16x128xf32> to vector<16x32xf32>
    %cst_19 = arith.constant dense<0.000000e+00> : vector<16x32xf32>
    %38 = tpu.matmul %36, %37, %cst_19 {dimension_numbers = #tpu.dot_dimension_numbers<[1], [0], [0], [1], [0, 0, 1, 1], [], []>} : vector<16x16xf32>, vector<16x32xf32>, vector<16x32xf32> -> vector<16x32xf32>
    %39 = vector.extract_strided_slice %4 {offsets = [0, 5], sizes = [16, 1], strides = [1, 1]} : vector<64x8xf32> to vector<16x1xf32>
    %40 = vector.extract_strided_slice %5 {offsets = [1, 0], sizes = [1, 16], strides = [1, 1]} : vector<8x64xf32> to vector<1x16xf32>
    %41 = vector.broadcast %39 : vector<16x1xf32> to vector<16x16xf32>
    %42 = vector.broadcast %40 : vector<1x16xf32> to vector<16x16xf32>
    %43 = arith.addf %41, %42 : vector<16x16xf32>
    %cst_20 = arith.constant 0.000000e+00 : f32
    %44 = vector.broadcast %cst_20 : f32 to vector<16x16xf32>
    %45 = arith.cmpf oge, %43, %44 : vector<16x16xf32>
    %cst_21 = arith.constant 2.000000e-01 : f32
    %46 = vector.broadcast %cst_21 : f32 to vector<16x16xf32>
    %47 = arith.mulf %46, %43 : vector<16x16xf32>
    %48 = arith.select %45, %43, %47 : vector<16x16xi1>, vector<16x16xf32>
    %cst_22 = arith.constant -1.000000e+30 : f32
    %49 = vector.broadcast %cst_22 : f32 to vector<16x16xf32>
    %50 = arith.select %10, %48, %49 : vector<16x16xi1>, vector<16x16xf32>
    %cst_23 = arith.constant dense<0xFF800000> : vector<16xf32>
    %51 = vector.multi_reduction <maximumf>, %50, %cst_23 [1] : vector<16x16xf32> to vector<16xf32>
    %52 = vector.shape_cast %51 : vector<16xf32> to vector<16x1xf32>
    %53 = vector.broadcast %52 : vector<16x1xf32> to vector<16x16xf32>
    %54 = arith.subf %50, %53 : vector<16x16xf32>
    %55 = math.exp %54 : vector<16x16xf32>
    %cst_24 = arith.constant 0.000000e+00 : f32
    %56 = vector.broadcast %cst_24 : f32 to vector<16x16xf32>
    %57 = arith.select %10, %55, %56 : vector<16x16xi1>, vector<16x16xf32>
    %cst_25 = arith.constant dense<0.000000e+00> : vector<16xf32>
    %58 = vector.multi_reduction <add>, %57, %cst_25 [1] : vector<16x16xf32> to vector<16xf32>
    %59 = vector.shape_cast %58 : vector<16xf32> to vector<16x1xf32>
    %cst_26 = arith.constant 1.000000e-30 : f32
    %60 = vector.broadcast %cst_26 : f32 to vector<16x1xf32>
    %61 = arith.maximumf %59, %60 : vector<16x1xf32>
    %62 = vector.broadcast %61 : vector<16x1xf32> to vector<16x16xf32>
    %63 = arith.divf %57, %62 : vector<16x16xf32>
    %64 = vector.extract_strided_slice %11 {offsets = [0, 32], sizes = [16, 32], strides = [1, 1]} : vector<16x128xf32> to vector<16x32xf32>
    %cst_27 = arith.constant dense<0.000000e+00> : vector<16x32xf32>
    %65 = tpu.matmul %63, %64, %cst_27 {dimension_numbers = #tpu.dot_dimension_numbers<[1], [0], [0], [1], [0, 0, 1, 1], [], []>} : vector<16x16xf32>, vector<16x32xf32>, vector<16x32xf32> -> vector<16x32xf32>
    %66 = vector.extract_strided_slice %4 {offsets = [0, 6], sizes = [16, 1], strides = [1, 1]} : vector<64x8xf32> to vector<16x1xf32>
    %67 = vector.extract_strided_slice %5 {offsets = [2, 0], sizes = [1, 16], strides = [1, 1]} : vector<8x64xf32> to vector<1x16xf32>
    %68 = vector.broadcast %66 : vector<16x1xf32> to vector<16x16xf32>
    %69 = vector.broadcast %67 : vector<1x16xf32> to vector<16x16xf32>
    %70 = arith.addf %68, %69 : vector<16x16xf32>
    %cst_28 = arith.constant 0.000000e+00 : f32
    %71 = vector.broadcast %cst_28 : f32 to vector<16x16xf32>
    %72 = arith.cmpf oge, %70, %71 : vector<16x16xf32>
    %cst_29 = arith.constant 2.000000e-01 : f32
    %73 = vector.broadcast %cst_29 : f32 to vector<16x16xf32>
    %74 = arith.mulf %73, %70 : vector<16x16xf32>
    %75 = arith.select %72, %70, %74 : vector<16x16xi1>, vector<16x16xf32>
    %cst_30 = arith.constant -1.000000e+30 : f32
    %76 = vector.broadcast %cst_30 : f32 to vector<16x16xf32>
    %77 = arith.select %10, %75, %76 : vector<16x16xi1>, vector<16x16xf32>
    %cst_31 = arith.constant dense<0xFF800000> : vector<16xf32>
    %78 = vector.multi_reduction <maximumf>, %77, %cst_31 [1] : vector<16x16xf32> to vector<16xf32>
    %79 = vector.shape_cast %78 : vector<16xf32> to vector<16x1xf32>
    %80 = vector.broadcast %79 : vector<16x1xf32> to vector<16x16xf32>
    %81 = arith.subf %77, %80 : vector<16x16xf32>
    %82 = math.exp %81 : vector<16x16xf32>
    %cst_32 = arith.constant 0.000000e+00 : f32
    %83 = vector.broadcast %cst_32 : f32 to vector<16x16xf32>
    %84 = arith.select %10, %82, %83 : vector<16x16xi1>, vector<16x16xf32>
    %cst_33 = arith.constant dense<0.000000e+00> : vector<16xf32>
    %85 = vector.multi_reduction <add>, %84, %cst_33 [1] : vector<16x16xf32> to vector<16xf32>
    %86 = vector.shape_cast %85 : vector<16xf32> to vector<16x1xf32>
    %cst_34 = arith.constant 1.000000e-30 : f32
    %87 = vector.broadcast %cst_34 : f32 to vector<16x1xf32>
    %88 = arith.maximumf %86, %87 : vector<16x1xf32>
    %89 = vector.broadcast %88 : vector<16x1xf32> to vector<16x16xf32>
    %90 = arith.divf %84, %89 : vector<16x16xf32>
    %91 = vector.extract_strided_slice %11 {offsets = [0, 64], sizes = [16, 32], strides = [1, 1]} : vector<16x128xf32> to vector<16x32xf32>
    %cst_35 = arith.constant dense<0.000000e+00> : vector<16x32xf32>
    %92 = tpu.matmul %90, %91, %cst_35 {dimension_numbers = #tpu.dot_dimension_numbers<[1], [0], [0], [1], [0, 0, 1, 1], [], []>} : vector<16x16xf32>, vector<16x32xf32>, vector<16x32xf32> -> vector<16x32xf32>
    %93 = vector.extract_strided_slice %4 {offsets = [0, 7], sizes = [16, 1], strides = [1, 1]} : vector<64x8xf32> to vector<16x1xf32>
    %94 = vector.extract_strided_slice %5 {offsets = [3, 0], sizes = [1, 16], strides = [1, 1]} : vector<8x64xf32> to vector<1x16xf32>
    %95 = vector.broadcast %93 : vector<16x1xf32> to vector<16x16xf32>
    %96 = vector.broadcast %94 : vector<1x16xf32> to vector<16x16xf32>
    %97 = arith.addf %95, %96 : vector<16x16xf32>
    %cst_36 = arith.constant 0.000000e+00 : f32
    %98 = vector.broadcast %cst_36 : f32 to vector<16x16xf32>
    %99 = arith.cmpf oge, %97, %98 : vector<16x16xf32>
    %cst_37 = arith.constant 2.000000e-01 : f32
    %100 = vector.broadcast %cst_37 : f32 to vector<16x16xf32>
    %101 = arith.mulf %100, %97 : vector<16x16xf32>
    %102 = arith.select %99, %97, %101 : vector<16x16xi1>, vector<16x16xf32>
    %cst_38 = arith.constant -1.000000e+30 : f32
    %103 = vector.broadcast %cst_38 : f32 to vector<16x16xf32>
    %104 = arith.select %10, %102, %103 : vector<16x16xi1>, vector<16x16xf32>
    %cst_39 = arith.constant dense<0xFF800000> : vector<16xf32>
    %105 = vector.multi_reduction <maximumf>, %104, %cst_39 [1] : vector<16x16xf32> to vector<16xf32>
    %106 = vector.shape_cast %105 : vector<16xf32> to vector<16x1xf32>
    %107 = vector.broadcast %106 : vector<16x1xf32> to vector<16x16xf32>
    %108 = arith.subf %104, %107 : vector<16x16xf32>
    %109 = math.exp %108 : vector<16x16xf32>
    %cst_40 = arith.constant 0.000000e+00 : f32
    %110 = vector.broadcast %cst_40 : f32 to vector<16x16xf32>
    %111 = arith.select %10, %109, %110 : vector<16x16xi1>, vector<16x16xf32>
    %cst_41 = arith.constant dense<0.000000e+00> : vector<16xf32>
    %112 = vector.multi_reduction <add>, %111, %cst_41 [1] : vector<16x16xf32> to vector<16xf32>
    %113 = vector.shape_cast %112 : vector<16xf32> to vector<16x1xf32>
    %cst_42 = arith.constant 1.000000e-30 : f32
    %114 = vector.broadcast %cst_42 : f32 to vector<16x1xf32>
    %115 = arith.maximumf %113, %114 : vector<16x1xf32>
    %116 = vector.broadcast %115 : vector<16x1xf32> to vector<16x16xf32>
    %117 = arith.divf %111, %116 : vector<16x16xf32>
    %118 = vector.extract_strided_slice %11 {offsets = [0, 96], sizes = [16, 32], strides = [1, 1]} : vector<16x128xf32> to vector<16x32xf32>
    %cst_43 = arith.constant dense<0.000000e+00> : vector<16x32xf32>
    %119 = tpu.matmul %117, %118, %cst_43 {dimension_numbers = #tpu.dot_dimension_numbers<[1], [0], [0], [1], [0, 0, 1, 1], [], []>} : vector<16x16xf32>, vector<16x32xf32>, vector<16x32xf32> -> vector<16x32xf32>
    %120 = tpu.concatenate %38, %65, %92, %119 in 1 : vector<16x32xf32>, vector<16x32xf32>, vector<16x32xf32>, vector<16x32xf32> -> vector<16x128xf32>
    %c1 = arith.constant 1 : index
    %c0_44 = arith.constant 0 : index
    %c0_45 = arith.constant 0 : index
    %121 = vector.load %arg2[%c1, %c0_44, %c0_45] : memref<4x16x16xf32, #tpu.memory_space<vmem>>, vector<1x16x16xf32>
    %122 = vector.shape_cast %121 : vector<1x16x16xf32> to vector<16x16xf32>
    %cst_46 = arith.constant 0.000000e+00 : f32
    %123 = vector.broadcast %cst_46 : f32 to vector<16x16xf32>
    %124 = arith.cmpf ogt, %122, %123 : vector<16x16xf32>
    %125 = vector.extract_strided_slice %2 {offsets = [16, 0], sizes = [16, 128], strides = [1, 1]} : vector<64x128xf32> to vector<16x128xf32>
    %126 = vector.extract_strided_slice %4 {offsets = [16, 4], sizes = [16, 1], strides = [1, 1]} : vector<64x8xf32> to vector<16x1xf32>
    %127 = vector.extract_strided_slice %5 {offsets = [0, 16], sizes = [1, 16], strides = [1, 1]} : vector<8x64xf32> to vector<1x16xf32>
    %128 = vector.broadcast %126 : vector<16x1xf32> to vector<16x16xf32>
    %129 = vector.broadcast %127 : vector<1x16xf32> to vector<16x16xf32>
    %130 = arith.addf %128, %129 : vector<16x16xf32>
    %cst_47 = arith.constant 0.000000e+00 : f32
    %131 = vector.broadcast %cst_47 : f32 to vector<16x16xf32>
    %132 = arith.cmpf oge, %130, %131 : vector<16x16xf32>
    %cst_48 = arith.constant 2.000000e-01 : f32
    %133 = vector.broadcast %cst_48 : f32 to vector<16x16xf32>
    %134 = arith.mulf %133, %130 : vector<16x16xf32>
    %135 = arith.select %132, %130, %134 : vector<16x16xi1>, vector<16x16xf32>
    %cst_49 = arith.constant -1.000000e+30 : f32
    %136 = vector.broadcast %cst_49 : f32 to vector<16x16xf32>
    %137 = arith.select %124, %135, %136 : vector<16x16xi1>, vector<16x16xf32>
    %cst_50 = arith.constant dense<0xFF800000> : vector<16xf32>
    %138 = vector.multi_reduction <maximumf>, %137, %cst_50 [1] : vector<16x16xf32> to vector<16xf32>
    %139 = vector.shape_cast %138 : vector<16xf32> to vector<16x1xf32>
    %140 = vector.broadcast %139 : vector<16x1xf32> to vector<16x16xf32>
    %141 = arith.subf %137, %140 : vector<16x16xf32>
    %142 = math.exp %141 : vector<16x16xf32>
    %cst_51 = arith.constant 0.000000e+00 : f32
    %143 = vector.broadcast %cst_51 : f32 to vector<16x16xf32>
    %144 = arith.select %124, %142, %143 : vector<16x16xi1>, vector<16x16xf32>
    %cst_52 = arith.constant dense<0.000000e+00> : vector<16xf32>
    %145 = vector.multi_reduction <add>, %144, %cst_52 [1] : vector<16x16xf32> to vector<16xf32>
    %146 = vector.shape_cast %145 : vector<16xf32> to vector<16x1xf32>
    %cst_53 = arith.constant 1.000000e-30 : f32
    %147 = vector.broadcast %cst_53 : f32 to vector<16x1xf32>
    %148 = arith.maximumf %146, %147 : vector<16x1xf32>
    %149 = vector.broadcast %148 : vector<16x1xf32> to vector<16x16xf32>
    %150 = arith.divf %144, %149 : vector<16x16xf32>
    %151 = vector.extract_strided_slice %125 {offsets = [0, 0], sizes = [16, 32], strides = [1, 1]} : vector<16x128xf32> to vector<16x32xf32>
    %cst_54 = arith.constant dense<0.000000e+00> : vector<16x32xf32>
    %152 = tpu.matmul %150, %151, %cst_54 {dimension_numbers = #tpu.dot_dimension_numbers<[1], [0], [0], [1], [0, 0, 1, 1], [], []>} : vector<16x16xf32>, vector<16x32xf32>, vector<16x32xf32> -> vector<16x32xf32>
    %153 = vector.extract_strided_slice %4 {offsets = [16, 5], sizes = [16, 1], strides = [1, 1]} : vector<64x8xf32> to vector<16x1xf32>
    %154 = vector.extract_strided_slice %5 {offsets = [1, 16], sizes = [1, 16], strides = [1, 1]} : vector<8x64xf32> to vector<1x16xf32>
    %155 = vector.broadcast %153 : vector<16x1xf32> to vector<16x16xf32>
    %156 = vector.broadcast %154 : vector<1x16xf32> to vector<16x16xf32>
    %157 = arith.addf %155, %156 : vector<16x16xf32>
    %cst_55 = arith.constant 0.000000e+00 : f32
    %158 = vector.broadcast %cst_55 : f32 to vector<16x16xf32>
    %159 = arith.cmpf oge, %157, %158 : vector<16x16xf32>
    %cst_56 = arith.constant 2.000000e-01 : f32
    %160 = vector.broadcast %cst_56 : f32 to vector<16x16xf32>
    %161 = arith.mulf %160, %157 : vector<16x16xf32>
    %162 = arith.select %159, %157, %161 : vector<16x16xi1>, vector<16x16xf32>
    %cst_57 = arith.constant -1.000000e+30 : f32
    %163 = vector.broadcast %cst_57 : f32 to vector<16x16xf32>
    %164 = arith.select %124, %162, %163 : vector<16x16xi1>, vector<16x16xf32>
    %cst_58 = arith.constant dense<0xFF800000> : vector<16xf32>
    %165 = vector.multi_reduction <maximumf>, %164, %cst_58 [1] : vector<16x16xf32> to vector<16xf32>
    %166 = vector.shape_cast %165 : vector<16xf32> to vector<16x1xf32>
    %167 = vector.broadcast %166 : vector<16x1xf32> to vector<16x16xf32>
    %168 = arith.subf %164, %167 : vector<16x16xf32>
    %169 = math.exp %168 : vector<16x16xf32>
    %cst_59 = arith.constant 0.000000e+00 : f32
    %170 = vector.broadcast %cst_59 : f32 to vector<16x16xf32>
    %171 = arith.select %124, %169, %170 : vector<16x16xi1>, vector<16x16xf32>
    %cst_60 = arith.constant dense<0.000000e+00> : vector<16xf32>
    %172 = vector.multi_reduction <add>, %171, %cst_60 [1] : vector<16x16xf32> to vector<16xf32>
    %173 = vector.shape_cast %172 : vector<16xf32> to vector<16x1xf32>
    %cst_61 = arith.constant 1.000000e-30 : f32
    %174 = vector.broadcast %cst_61 : f32 to vector<16x1xf32>
    %175 = arith.maximumf %173, %174 : vector<16x1xf32>
    %176 = vector.broadcast %175 : vector<16x1xf32> to vector<16x16xf32>
    %177 = arith.divf %171, %176 : vector<16x16xf32>
    %178 = vector.extract_strided_slice %125 {offsets = [0, 32], sizes = [16, 32], strides = [1, 1]} : vector<16x128xf32> to vector<16x32xf32>
    %cst_62 = arith.constant dense<0.000000e+00> : vector<16x32xf32>
    %179 = tpu.matmul %177, %178, %cst_62 {dimension_numbers = #tpu.dot_dimension_numbers<[1], [0], [0], [1], [0, 0, 1, 1], [], []>} : vector<16x16xf32>, vector<16x32xf32>, vector<16x32xf32> -> vector<16x32xf32>
    %180 = vector.extract_strided_slice %4 {offsets = [16, 6], sizes = [16, 1], strides = [1, 1]} : vector<64x8xf32> to vector<16x1xf32>
    %181 = vector.extract_strided_slice %5 {offsets = [2, 16], sizes = [1, 16], strides = [1, 1]} : vector<8x64xf32> to vector<1x16xf32>
    %182 = vector.broadcast %180 : vector<16x1xf32> to vector<16x16xf32>
    %183 = vector.broadcast %181 : vector<1x16xf32> to vector<16x16xf32>
    %184 = arith.addf %182, %183 : vector<16x16xf32>
    %cst_63 = arith.constant 0.000000e+00 : f32
    %185 = vector.broadcast %cst_63 : f32 to vector<16x16xf32>
    %186 = arith.cmpf oge, %184, %185 : vector<16x16xf32>
    %cst_64 = arith.constant 2.000000e-01 : f32
    %187 = vector.broadcast %cst_64 : f32 to vector<16x16xf32>
    %188 = arith.mulf %187, %184 : vector<16x16xf32>
    %189 = arith.select %186, %184, %188 : vector<16x16xi1>, vector<16x16xf32>
    %cst_65 = arith.constant -1.000000e+30 : f32
    %190 = vector.broadcast %cst_65 : f32 to vector<16x16xf32>
    %191 = arith.select %124, %189, %190 : vector<16x16xi1>, vector<16x16xf32>
    %cst_66 = arith.constant dense<0xFF800000> : vector<16xf32>
    %192 = vector.multi_reduction <maximumf>, %191, %cst_66 [1] : vector<16x16xf32> to vector<16xf32>
    %193 = vector.shape_cast %192 : vector<16xf32> to vector<16x1xf32>
    %194 = vector.broadcast %193 : vector<16x1xf32> to vector<16x16xf32>
    %195 = arith.subf %191, %194 : vector<16x16xf32>
    %196 = math.exp %195 : vector<16x16xf32>
    %cst_67 = arith.constant 0.000000e+00 : f32
    %197 = vector.broadcast %cst_67 : f32 to vector<16x16xf32>
    %198 = arith.select %124, %196, %197 : vector<16x16xi1>, vector<16x16xf32>
    %cst_68 = arith.constant dense<0.000000e+00> : vector<16xf32>
    %199 = vector.multi_reduction <add>, %198, %cst_68 [1] : vector<16x16xf32> to vector<16xf32>
    %200 = vector.shape_cast %199 : vector<16xf32> to vector<16x1xf32>
    %cst_69 = arith.constant 1.000000e-30 : f32
    %201 = vector.broadcast %cst_69 : f32 to vector<16x1xf32>
    %202 = arith.maximumf %200, %201 : vector<16x1xf32>
    %203 = vector.broadcast %202 : vector<16x1xf32> to vector<16x16xf32>
    %204 = arith.divf %198, %203 : vector<16x16xf32>
    %205 = vector.extract_strided_slice %125 {offsets = [0, 64], sizes = [16, 32], strides = [1, 1]} : vector<16x128xf32> to vector<16x32xf32>
    %cst_70 = arith.constant dense<0.000000e+00> : vector<16x32xf32>
    %206 = tpu.matmul %204, %205, %cst_70 {dimension_numbers = #tpu.dot_dimension_numbers<[1], [0], [0], [1], [0, 0, 1, 1], [], []>} : vector<16x16xf32>, vector<16x32xf32>, vector<16x32xf32> -> vector<16x32xf32>
    %207 = vector.extract_strided_slice %4 {offsets = [16, 7], sizes = [16, 1], strides = [1, 1]} : vector<64x8xf32> to vector<16x1xf32>
    %208 = vector.extract_strided_slice %5 {offsets = [3, 16], sizes = [1, 16], strides = [1, 1]} : vector<8x64xf32> to vector<1x16xf32>
    %209 = vector.broadcast %207 : vector<16x1xf32> to vector<16x16xf32>
    %210 = vector.broadcast %208 : vector<1x16xf32> to vector<16x16xf32>
    %211 = arith.addf %209, %210 : vector<16x16xf32>
    %cst_71 = arith.constant 0.000000e+00 : f32
    %212 = vector.broadcast %cst_71 : f32 to vector<16x16xf32>
    %213 = arith.cmpf oge, %211, %212 : vector<16x16xf32>
    %cst_72 = arith.constant 2.000000e-01 : f32
    %214 = vector.broadcast %cst_72 : f32 to vector<16x16xf32>
    %215 = arith.mulf %214, %211 : vector<16x16xf32>
    %216 = arith.select %213, %211, %215 : vector<16x16xi1>, vector<16x16xf32>
    %cst_73 = arith.constant -1.000000e+30 : f32
    %217 = vector.broadcast %cst_73 : f32 to vector<16x16xf32>
    %218 = arith.select %124, %216, %217 : vector<16x16xi1>, vector<16x16xf32>
    %cst_74 = arith.constant dense<0xFF800000> : vector<16xf32>
    %219 = vector.multi_reduction <maximumf>, %218, %cst_74 [1] : vector<16x16xf32> to vector<16xf32>
    %220 = vector.shape_cast %219 : vector<16xf32> to vector<16x1xf32>
    %221 = vector.broadcast %220 : vector<16x1xf32> to vector<16x16xf32>
    %222 = arith.subf %218, %221 : vector<16x16xf32>
    %223 = math.exp %222 : vector<16x16xf32>
    %cst_75 = arith.constant 0.000000e+00 : f32
    %224 = vector.broadcast %cst_75 : f32 to vector<16x16xf32>
    %225 = arith.select %124, %223, %224 : vector<16x16xi1>, vector<16x16xf32>
    %cst_76 = arith.constant dense<0.000000e+00> : vector<16xf32>
    %226 = vector.multi_reduction <add>, %225, %cst_76 [1] : vector<16x16xf32> to vector<16xf32>
    %227 = vector.shape_cast %226 : vector<16xf32> to vector<16x1xf32>
    %cst_77 = arith.constant 1.000000e-30 : f32
    %228 = vector.broadcast %cst_77 : f32 to vector<16x1xf32>
    %229 = arith.maximumf %227, %228 : vector<16x1xf32>
    %230 = vector.broadcast %229 : vector<16x1xf32> to vector<16x16xf32>
    %231 = arith.divf %225, %230 : vector<16x16xf32>
    %232 = vector.extract_strided_slice %125 {offsets = [0, 96], sizes = [16, 32], strides = [1, 1]} : vector<16x128xf32> to vector<16x32xf32>
    %cst_78 = arith.constant dense<0.000000e+00> : vector<16x32xf32>
    %233 = tpu.matmul %231, %232, %cst_78 {dimension_numbers = #tpu.dot_dimension_numbers<[1], [0], [0], [1], [0, 0, 1, 1], [], []>} : vector<16x16xf32>, vector<16x32xf32>, vector<16x32xf32> -> vector<16x32xf32>
    %234 = tpu.concatenate %152, %179, %206, %233 in 1 : vector<16x32xf32>, vector<16x32xf32>, vector<16x32xf32>, vector<16x32xf32> -> vector<16x128xf32>
    %c2 = arith.constant 2 : index
    %c0_79 = arith.constant 0 : index
    %c0_80 = arith.constant 0 : index
    %235 = vector.load %arg2[%c2, %c0_79, %c0_80] : memref<4x16x16xf32, #tpu.memory_space<vmem>>, vector<1x16x16xf32>
    %236 = vector.shape_cast %235 : vector<1x16x16xf32> to vector<16x16xf32>
    %cst_81 = arith.constant 0.000000e+00 : f32
    %237 = vector.broadcast %cst_81 : f32 to vector<16x16xf32>
    %238 = arith.cmpf ogt, %236, %237 : vector<16x16xf32>
    %239 = vector.extract_strided_slice %2 {offsets = [32, 0], sizes = [16, 128], strides = [1, 1]} : vector<64x128xf32> to vector<16x128xf32>
    %240 = vector.extract_strided_slice %4 {offsets = [32, 4], sizes = [16, 1], strides = [1, 1]} : vector<64x8xf32> to vector<16x1xf32>
    %241 = vector.extract_strided_slice %5 {offsets = [0, 32], sizes = [1, 16], strides = [1, 1]} : vector<8x64xf32> to vector<1x16xf32>
    %242 = vector.broadcast %240 : vector<16x1xf32> to vector<16x16xf32>
    %243 = vector.broadcast %241 : vector<1x16xf32> to vector<16x16xf32>
    %244 = arith.addf %242, %243 : vector<16x16xf32>
    %cst_82 = arith.constant 0.000000e+00 : f32
    %245 = vector.broadcast %cst_82 : f32 to vector<16x16xf32>
    %246 = arith.cmpf oge, %244, %245 : vector<16x16xf32>
    %cst_83 = arith.constant 2.000000e-01 : f32
    %247 = vector.broadcast %cst_83 : f32 to vector<16x16xf32>
    %248 = arith.mulf %247, %244 : vector<16x16xf32>
    %249 = arith.select %246, %244, %248 : vector<16x16xi1>, vector<16x16xf32>
    %cst_84 = arith.constant -1.000000e+30 : f32
    %250 = vector.broadcast %cst_84 : f32 to vector<16x16xf32>
    %251 = arith.select %238, %249, %250 : vector<16x16xi1>, vector<16x16xf32>
    %cst_85 = arith.constant dense<0xFF800000> : vector<16xf32>
    %252 = vector.multi_reduction <maximumf>, %251, %cst_85 [1] : vector<16x16xf32> to vector<16xf32>
    %253 = vector.shape_cast %252 : vector<16xf32> to vector<16x1xf32>
    %254 = vector.broadcast %253 : vector<16x1xf32> to vector<16x16xf32>
    %255 = arith.subf %251, %254 : vector<16x16xf32>
    %256 = math.exp %255 : vector<16x16xf32>
    %cst_86 = arith.constant 0.000000e+00 : f32
    %257 = vector.broadcast %cst_86 : f32 to vector<16x16xf32>
    %258 = arith.select %238, %256, %257 : vector<16x16xi1>, vector<16x16xf32>
    %cst_87 = arith.constant dense<0.000000e+00> : vector<16xf32>
    %259 = vector.multi_reduction <add>, %258, %cst_87 [1] : vector<16x16xf32> to vector<16xf32>
    %260 = vector.shape_cast %259 : vector<16xf32> to vector<16x1xf32>
    %cst_88 = arith.constant 1.000000e-30 : f32
    %261 = vector.broadcast %cst_88 : f32 to vector<16x1xf32>
    %262 = arith.maximumf %260, %261 : vector<16x1xf32>
    %263 = vector.broadcast %262 : vector<16x1xf32> to vector<16x16xf32>
    %264 = arith.divf %258, %263 : vector<16x16xf32>
    %265 = vector.extract_strided_slice %239 {offsets = [0, 0], sizes = [16, 32], strides = [1, 1]} : vector<16x128xf32> to vector<16x32xf32>
    %cst_89 = arith.constant dense<0.000000e+00> : vector<16x32xf32>
    %266 = tpu.matmul %264, %265, %cst_89 {dimension_numbers = #tpu.dot_dimension_numbers<[1], [0], [0], [1], [0, 0, 1, 1], [], []>} : vector<16x16xf32>, vector<16x32xf32>, vector<16x32xf32> -> vector<16x32xf32>
    %267 = vector.extract_strided_slice %4 {offsets = [32, 5], sizes = [16, 1], strides = [1, 1]} : vector<64x8xf32> to vector<16x1xf32>
    %268 = vector.extract_strided_slice %5 {offsets = [1, 32], sizes = [1, 16], strides = [1, 1]} : vector<8x64xf32> to vector<1x16xf32>
    %269 = vector.broadcast %267 : vector<16x1xf32> to vector<16x16xf32>
    %270 = vector.broadcast %268 : vector<1x16xf32> to vector<16x16xf32>
    %271 = arith.addf %269, %270 : vector<16x16xf32>
    %cst_90 = arith.constant 0.000000e+00 : f32
    %272 = vector.broadcast %cst_90 : f32 to vector<16x16xf32>
    %273 = arith.cmpf oge, %271, %272 : vector<16x16xf32>
    %cst_91 = arith.constant 2.000000e-01 : f32
    %274 = vector.broadcast %cst_91 : f32 to vector<16x16xf32>
    %275 = arith.mulf %274, %271 : vector<16x16xf32>
    %276 = arith.select %273, %271, %275 : vector<16x16xi1>, vector<16x16xf32>
    %cst_92 = arith.constant -1.000000e+30 : f32
    %277 = vector.broadcast %cst_92 : f32 to vector<16x16xf32>
    %278 = arith.select %238, %276, %277 : vector<16x16xi1>, vector<16x16xf32>
    %cst_93 = arith.constant dense<0xFF800000> : vector<16xf32>
    %279 = vector.multi_reduction <maximumf>, %278, %cst_93 [1] : vector<16x16xf32> to vector<16xf32>
    %280 = vector.shape_cast %279 : vector<16xf32> to vector<16x1xf32>
    %281 = vector.broadcast %280 : vector<16x1xf32> to vector<16x16xf32>
    %282 = arith.subf %278, %281 : vector<16x16xf32>
    %283 = math.exp %282 : vector<16x16xf32>
    %cst_94 = arith.constant 0.000000e+00 : f32
    %284 = vector.broadcast %cst_94 : f32 to vector<16x16xf32>
    %285 = arith.select %238, %283, %284 : vector<16x16xi1>, vector<16x16xf32>
    %cst_95 = arith.constant dense<0.000000e+00> : vector<16xf32>
    %286 = vector.multi_reduction <add>, %285, %cst_95 [1] : vector<16x16xf32> to vector<16xf32>
    %287 = vector.shape_cast %286 : vector<16xf32> to vector<16x1xf32>
    %cst_96 = arith.constant 1.000000e-30 : f32
    %288 = vector.broadcast %cst_96 : f32 to vector<16x1xf32>
    %289 = arith.maximumf %287, %288 : vector<16x1xf32>
    %290 = vector.broadcast %289 : vector<16x1xf32> to vector<16x16xf32>
    %291 = arith.divf %285, %290 : vector<16x16xf32>
    %292 = vector.extract_strided_slice %239 {offsets = [0, 32], sizes = [16, 32], strides = [1, 1]} : vector<16x128xf32> to vector<16x32xf32>
    %cst_97 = arith.constant dense<0.000000e+00> : vector<16x32xf32>
    %293 = tpu.matmul %291, %292, %cst_97 {dimension_numbers = #tpu.dot_dimension_numbers<[1], [0], [0], [1], [0, 0, 1, 1], [], []>} : vector<16x16xf32>, vector<16x32xf32>, vector<16x32xf32> -> vector<16x32xf32>
    %294 = vector.extract_strided_slice %4 {offsets = [32, 6], sizes = [16, 1], strides = [1, 1]} : vector<64x8xf32> to vector<16x1xf32>
    %295 = vector.extract_strided_slice %5 {offsets = [2, 32], sizes = [1, 16], strides = [1, 1]} : vector<8x64xf32> to vector<1x16xf32>
    %296 = vector.broadcast %294 : vector<16x1xf32> to vector<16x16xf32>
    %297 = vector.broadcast %295 : vector<1x16xf32> to vector<16x16xf32>
    %298 = arith.addf %296, %297 : vector<16x16xf32>
    %cst_98 = arith.constant 0.000000e+00 : f32
    %299 = vector.broadcast %cst_98 : f32 to vector<16x16xf32>
    %300 = arith.cmpf oge, %298, %299 : vector<16x16xf32>
    %cst_99 = arith.constant 2.000000e-01 : f32
    %301 = vector.broadcast %cst_99 : f32 to vector<16x16xf32>
    %302 = arith.mulf %301, %298 : vector<16x16xf32>
    %303 = arith.select %300, %298, %302 : vector<16x16xi1>, vector<16x16xf32>
    %cst_100 = arith.constant -1.000000e+30 : f32
    %304 = vector.broadcast %cst_100 : f32 to vector<16x16xf32>
    %305 = arith.select %238, %303, %304 : vector<16x16xi1>, vector<16x16xf32>
    %cst_101 = arith.constant dense<0xFF800000> : vector<16xf32>
    %306 = vector.multi_reduction <maximumf>, %305, %cst_101 [1] : vector<16x16xf32> to vector<16xf32>
    %307 = vector.shape_cast %306 : vector<16xf32> to vector<16x1xf32>
    %308 = vector.broadcast %307 : vector<16x1xf32> to vector<16x16xf32>
    %309 = arith.subf %305, %308 : vector<16x16xf32>
    %310 = math.exp %309 : vector<16x16xf32>
    %cst_102 = arith.constant 0.000000e+00 : f32
    %311 = vector.broadcast %cst_102 : f32 to vector<16x16xf32>
    %312 = arith.select %238, %310, %311 : vector<16x16xi1>, vector<16x16xf32>
    %cst_103 = arith.constant dense<0.000000e+00> : vector<16xf32>
    %313 = vector.multi_reduction <add>, %312, %cst_103 [1] : vector<16x16xf32> to vector<16xf32>
    %314 = vector.shape_cast %313 : vector<16xf32> to vector<16x1xf32>
    %cst_104 = arith.constant 1.000000e-30 : f32
    %315 = vector.broadcast %cst_104 : f32 to vector<16x1xf32>
    %316 = arith.maximumf %314, %315 : vector<16x1xf32>
    %317 = vector.broadcast %316 : vector<16x1xf32> to vector<16x16xf32>
    %318 = arith.divf %312, %317 : vector<16x16xf32>
    %319 = vector.extract_strided_slice %239 {offsets = [0, 64], sizes = [16, 32], strides = [1, 1]} : vector<16x128xf32> to vector<16x32xf32>
    %cst_105 = arith.constant dense<0.000000e+00> : vector<16x32xf32>
    %320 = tpu.matmul %318, %319, %cst_105 {dimension_numbers = #tpu.dot_dimension_numbers<[1], [0], [0], [1], [0, 0, 1, 1], [], []>} : vector<16x16xf32>, vector<16x32xf32>, vector<16x32xf32> -> vector<16x32xf32>
    %321 = vector.extract_strided_slice %4 {offsets = [32, 7], sizes = [16, 1], strides = [1, 1]} : vector<64x8xf32> to vector<16x1xf32>
    %322 = vector.extract_strided_slice %5 {offsets = [3, 32], sizes = [1, 16], strides = [1, 1]} : vector<8x64xf32> to vector<1x16xf32>
    %323 = vector.broadcast %321 : vector<16x1xf32> to vector<16x16xf32>
    %324 = vector.broadcast %322 : vector<1x16xf32> to vector<16x16xf32>
    %325 = arith.addf %323, %324 : vector<16x16xf32>
    %cst_106 = arith.constant 0.000000e+00 : f32
    %326 = vector.broadcast %cst_106 : f32 to vector<16x16xf32>
    %327 = arith.cmpf oge, %325, %326 : vector<16x16xf32>
    %cst_107 = arith.constant 2.000000e-01 : f32
    %328 = vector.broadcast %cst_107 : f32 to vector<16x16xf32>
    %329 = arith.mulf %328, %325 : vector<16x16xf32>
    %330 = arith.select %327, %325, %329 : vector<16x16xi1>, vector<16x16xf32>
    %cst_108 = arith.constant -1.000000e+30 : f32
    %331 = vector.broadcast %cst_108 : f32 to vector<16x16xf32>
    %332 = arith.select %238, %330, %331 : vector<16x16xi1>, vector<16x16xf32>
    %cst_109 = arith.constant dense<0xFF800000> : vector<16xf32>
    %333 = vector.multi_reduction <maximumf>, %332, %cst_109 [1] : vector<16x16xf32> to vector<16xf32>
    %334 = vector.shape_cast %333 : vector<16xf32> to vector<16x1xf32>
    %335 = vector.broadcast %334 : vector<16x1xf32> to vector<16x16xf32>
    %336 = arith.subf %332, %335 : vector<16x16xf32>
    %337 = math.exp %336 : vector<16x16xf32>
    %cst_110 = arith.constant 0.000000e+00 : f32
    %338 = vector.broadcast %cst_110 : f32 to vector<16x16xf32>
    %339 = arith.select %238, %337, %338 : vector<16x16xi1>, vector<16x16xf32>
    %cst_111 = arith.constant dense<0.000000e+00> : vector<16xf32>
    %340 = vector.multi_reduction <add>, %339, %cst_111 [1] : vector<16x16xf32> to vector<16xf32>
    %341 = vector.shape_cast %340 : vector<16xf32> to vector<16x1xf32>
    %cst_112 = arith.constant 1.000000e-30 : f32
    %342 = vector.broadcast %cst_112 : f32 to vector<16x1xf32>
    %343 = arith.maximumf %341, %342 : vector<16x1xf32>
    %344 = vector.broadcast %343 : vector<16x1xf32> to vector<16x16xf32>
    %345 = arith.divf %339, %344 : vector<16x16xf32>
    %346 = vector.extract_strided_slice %239 {offsets = [0, 96], sizes = [16, 32], strides = [1, 1]} : vector<16x128xf32> to vector<16x32xf32>
    %cst_113 = arith.constant dense<0.000000e+00> : vector<16x32xf32>
    %347 = tpu.matmul %345, %346, %cst_113 {dimension_numbers = #tpu.dot_dimension_numbers<[1], [0], [0], [1], [0, 0, 1, 1], [], []>} : vector<16x16xf32>, vector<16x32xf32>, vector<16x32xf32> -> vector<16x32xf32>
    %348 = tpu.concatenate %266, %293, %320, %347 in 1 : vector<16x32xf32>, vector<16x32xf32>, vector<16x32xf32>, vector<16x32xf32> -> vector<16x128xf32>
    %c3 = arith.constant 3 : index
    %c0_114 = arith.constant 0 : index
    %c0_115 = arith.constant 0 : index
    %349 = vector.load %arg2[%c3, %c0_114, %c0_115] : memref<4x16x16xf32, #tpu.memory_space<vmem>>, vector<1x16x16xf32>
    %350 = vector.shape_cast %349 : vector<1x16x16xf32> to vector<16x16xf32>
    %cst_116 = arith.constant 0.000000e+00 : f32
    %351 = vector.broadcast %cst_116 : f32 to vector<16x16xf32>
    %352 = arith.cmpf ogt, %350, %351 : vector<16x16xf32>
    %353 = vector.extract_strided_slice %2 {offsets = [48, 0], sizes = [16, 128], strides = [1, 1]} : vector<64x128xf32> to vector<16x128xf32>
    %354 = vector.extract_strided_slice %4 {offsets = [48, 4], sizes = [16, 1], strides = [1, 1]} : vector<64x8xf32> to vector<16x1xf32>
    %355 = vector.extract_strided_slice %5 {offsets = [0, 48], sizes = [1, 16], strides = [1, 1]} : vector<8x64xf32> to vector<1x16xf32>
    %356 = vector.broadcast %354 : vector<16x1xf32> to vector<16x16xf32>
    %357 = vector.broadcast %355 : vector<1x16xf32> to vector<16x16xf32>
    %358 = arith.addf %356, %357 : vector<16x16xf32>
    %cst_117 = arith.constant 0.000000e+00 : f32
    %359 = vector.broadcast %cst_117 : f32 to vector<16x16xf32>
    %360 = arith.cmpf oge, %358, %359 : vector<16x16xf32>
    %cst_118 = arith.constant 2.000000e-01 : f32
    %361 = vector.broadcast %cst_118 : f32 to vector<16x16xf32>
    %362 = arith.mulf %361, %358 : vector<16x16xf32>
    %363 = arith.select %360, %358, %362 : vector<16x16xi1>, vector<16x16xf32>
    %cst_119 = arith.constant -1.000000e+30 : f32
    %364 = vector.broadcast %cst_119 : f32 to vector<16x16xf32>
    %365 = arith.select %352, %363, %364 : vector<16x16xi1>, vector<16x16xf32>
    %cst_120 = arith.constant dense<0xFF800000> : vector<16xf32>
    %366 = vector.multi_reduction <maximumf>, %365, %cst_120 [1] : vector<16x16xf32> to vector<16xf32>
    %367 = vector.shape_cast %366 : vector<16xf32> to vector<16x1xf32>
    %368 = vector.broadcast %367 : vector<16x1xf32> to vector<16x16xf32>
    %369 = arith.subf %365, %368 : vector<16x16xf32>
    %370 = math.exp %369 : vector<16x16xf32>
    %cst_121 = arith.constant 0.000000e+00 : f32
    %371 = vector.broadcast %cst_121 : f32 to vector<16x16xf32>
    %372 = arith.select %352, %370, %371 : vector<16x16xi1>, vector<16x16xf32>
    %cst_122 = arith.constant dense<0.000000e+00> : vector<16xf32>
    %373 = vector.multi_reduction <add>, %372, %cst_122 [1] : vector<16x16xf32> to vector<16xf32>
    %374 = vector.shape_cast %373 : vector<16xf32> to vector<16x1xf32>
    %cst_123 = arith.constant 1.000000e-30 : f32
    %375 = vector.broadcast %cst_123 : f32 to vector<16x1xf32>
    %376 = arith.maximumf %374, %375 : vector<16x1xf32>
    %377 = vector.broadcast %376 : vector<16x1xf32> to vector<16x16xf32>
    %378 = arith.divf %372, %377 : vector<16x16xf32>
    %379 = vector.extract_strided_slice %353 {offsets = [0, 0], sizes = [16, 32], strides = [1, 1]} : vector<16x128xf32> to vector<16x32xf32>
    %cst_124 = arith.constant dense<0.000000e+00> : vector<16x32xf32>
    %380 = tpu.matmul %378, %379, %cst_124 {dimension_numbers = #tpu.dot_dimension_numbers<[1], [0], [0], [1], [0, 0, 1, 1], [], []>} : vector<16x16xf32>, vector<16x32xf32>, vector<16x32xf32> -> vector<16x32xf32>
    %381 = vector.extract_strided_slice %4 {offsets = [48, 5], sizes = [16, 1], strides = [1, 1]} : vector<64x8xf32> to vector<16x1xf32>
    %382 = vector.extract_strided_slice %5 {offsets = [1, 48], sizes = [1, 16], strides = [1, 1]} : vector<8x64xf32> to vector<1x16xf32>
    %383 = vector.broadcast %381 : vector<16x1xf32> to vector<16x16xf32>
    %384 = vector.broadcast %382 : vector<1x16xf32> to vector<16x16xf32>
    %385 = arith.addf %383, %384 : vector<16x16xf32>
    %cst_125 = arith.constant 0.000000e+00 : f32
    %386 = vector.broadcast %cst_125 : f32 to vector<16x16xf32>
    %387 = arith.cmpf oge, %385, %386 : vector<16x16xf32>
    %cst_126 = arith.constant 2.000000e-01 : f32
    %388 = vector.broadcast %cst_126 : f32 to vector<16x16xf32>
    %389 = arith.mulf %388, %385 : vector<16x16xf32>
    %390 = arith.select %387, %385, %389 : vector<16x16xi1>, vector<16x16xf32>
    %cst_127 = arith.constant -1.000000e+30 : f32
    %391 = vector.broadcast %cst_127 : f32 to vector<16x16xf32>
    %392 = arith.select %352, %390, %391 : vector<16x16xi1>, vector<16x16xf32>
    %cst_128 = arith.constant dense<0xFF800000> : vector<16xf32>
    %393 = vector.multi_reduction <maximumf>, %392, %cst_128 [1] : vector<16x16xf32> to vector<16xf32>
    %394 = vector.shape_cast %393 : vector<16xf32> to vector<16x1xf32>
    %395 = vector.broadcast %394 : vector<16x1xf32> to vector<16x16xf32>
    %396 = arith.subf %392, %395 : vector<16x16xf32>
    %397 = math.exp %396 : vector<16x16xf32>
    %cst_129 = arith.constant 0.000000e+00 : f32
    %398 = vector.broadcast %cst_129 : f32 to vector<16x16xf32>
    %399 = arith.select %352, %397, %398 : vector<16x16xi1>, vector<16x16xf32>
    %cst_130 = arith.constant dense<0.000000e+00> : vector<16xf32>
    %400 = vector.multi_reduction <add>, %399, %cst_130 [1] : vector<16x16xf32> to vector<16xf32>
    %401 = vector.shape_cast %400 : vector<16xf32> to vector<16x1xf32>
    %cst_131 = arith.constant 1.000000e-30 : f32
    %402 = vector.broadcast %cst_131 : f32 to vector<16x1xf32>
    %403 = arith.maximumf %401, %402 : vector<16x1xf32>
    %404 = vector.broadcast %403 : vector<16x1xf32> to vector<16x16xf32>
    %405 = arith.divf %399, %404 : vector<16x16xf32>
    %406 = vector.extract_strided_slice %353 {offsets = [0, 32], sizes = [16, 32], strides = [1, 1]} : vector<16x128xf32> to vector<16x32xf32>
    %cst_132 = arith.constant dense<0.000000e+00> : vector<16x32xf32>
    %407 = tpu.matmul %405, %406, %cst_132 {dimension_numbers = #tpu.dot_dimension_numbers<[1], [0], [0], [1], [0, 0, 1, 1], [], []>} : vector<16x16xf32>, vector<16x32xf32>, vector<16x32xf32> -> vector<16x32xf32>
    %408 = vector.extract_strided_slice %4 {offsets = [48, 6], sizes = [16, 1], strides = [1, 1]} : vector<64x8xf32> to vector<16x1xf32>
    %409 = vector.extract_strided_slice %5 {offsets = [2, 48], sizes = [1, 16], strides = [1, 1]} : vector<8x64xf32> to vector<1x16xf32>
    %410 = vector.broadcast %408 : vector<16x1xf32> to vector<16x16xf32>
    %411 = vector.broadcast %409 : vector<1x16xf32> to vector<16x16xf32>
    %412 = arith.addf %410, %411 : vector<16x16xf32>
    %cst_133 = arith.constant 0.000000e+00 : f32
    %413 = vector.broadcast %cst_133 : f32 to vector<16x16xf32>
    %414 = arith.cmpf oge, %412, %413 : vector<16x16xf32>
    %cst_134 = arith.constant 2.000000e-01 : f32
    %415 = vector.broadcast %cst_134 : f32 to vector<16x16xf32>
    %416 = arith.mulf %415, %412 : vector<16x16xf32>
    %417 = arith.select %414, %412, %416 : vector<16x16xi1>, vector<16x16xf32>
    %cst_135 = arith.constant -1.000000e+30 : f32
    %418 = vector.broadcast %cst_135 : f32 to vector<16x16xf32>
    %419 = arith.select %352, %417, %418 : vector<16x16xi1>, vector<16x16xf32>
    %cst_136 = arith.constant dense<0xFF800000> : vector<16xf32>
    %420 = vector.multi_reduction <maximumf>, %419, %cst_136 [1] : vector<16x16xf32> to vector<16xf32>
    %421 = vector.shape_cast %420 : vector<16xf32> to vector<16x1xf32>
    %422 = vector.broadcast %421 : vector<16x1xf32> to vector<16x16xf32>
    %423 = arith.subf %419, %422 : vector<16x16xf32>
    %424 = math.exp %423 : vector<16x16xf32>
    %cst_137 = arith.constant 0.000000e+00 : f32
    %425 = vector.broadcast %cst_137 : f32 to vector<16x16xf32>
    %426 = arith.select %352, %424, %425 : vector<16x16xi1>, vector<16x16xf32>
    %cst_138 = arith.constant dense<0.000000e+00> : vector<16xf32>
    %427 = vector.multi_reduction <add>, %426, %cst_138 [1] : vector<16x16xf32> to vector<16xf32>
    %428 = vector.shape_cast %427 : vector<16xf32> to vector<16x1xf32>
    %cst_139 = arith.constant 1.000000e-30 : f32
    %429 = vector.broadcast %cst_139 : f32 to vector<16x1xf32>
    %430 = arith.maximumf %428, %429 : vector<16x1xf32>
    %431 = vector.broadcast %430 : vector<16x1xf32> to vector<16x16xf32>
    %432 = arith.divf %426, %431 : vector<16x16xf32>
    %433 = vector.extract_strided_slice %353 {offsets = [0, 64], sizes = [16, 32], strides = [1, 1]} : vector<16x128xf32> to vector<16x32xf32>
    %cst_140 = arith.constant dense<0.000000e+00> : vector<16x32xf32>
    %434 = tpu.matmul %432, %433, %cst_140 {dimension_numbers = #tpu.dot_dimension_numbers<[1], [0], [0], [1], [0, 0, 1, 1], [], []>} : vector<16x16xf32>, vector<16x32xf32>, vector<16x32xf32> -> vector<16x32xf32>
    %435 = vector.extract_strided_slice %4 {offsets = [48, 7], sizes = [16, 1], strides = [1, 1]} : vector<64x8xf32> to vector<16x1xf32>
    %436 = vector.extract_strided_slice %5 {offsets = [3, 48], sizes = [1, 16], strides = [1, 1]} : vector<8x64xf32> to vector<1x16xf32>
    %437 = vector.broadcast %435 : vector<16x1xf32> to vector<16x16xf32>
    %438 = vector.broadcast %436 : vector<1x16xf32> to vector<16x16xf32>
    %439 = arith.addf %437, %438 : vector<16x16xf32>
    %cst_141 = arith.constant 0.000000e+00 : f32
    %440 = vector.broadcast %cst_141 : f32 to vector<16x16xf32>
    %441 = arith.cmpf oge, %439, %440 : vector<16x16xf32>
    %cst_142 = arith.constant 2.000000e-01 : f32
    %442 = vector.broadcast %cst_142 : f32 to vector<16x16xf32>
    %443 = arith.mulf %442, %439 : vector<16x16xf32>
    %444 = arith.select %441, %439, %443 : vector<16x16xi1>, vector<16x16xf32>
    %cst_143 = arith.constant -1.000000e+30 : f32
    %445 = vector.broadcast %cst_143 : f32 to vector<16x16xf32>
    %446 = arith.select %352, %444, %445 : vector<16x16xi1>, vector<16x16xf32>
    %cst_144 = arith.constant dense<0xFF800000> : vector<16xf32>
    %447 = vector.multi_reduction <maximumf>, %446, %cst_144 [1] : vector<16x16xf32> to vector<16xf32>
    %448 = vector.shape_cast %447 : vector<16xf32> to vector<16x1xf32>
    %449 = vector.broadcast %448 : vector<16x1xf32> to vector<16x16xf32>
    %450 = arith.subf %446, %449 : vector<16x16xf32>
    %451 = math.exp %450 : vector<16x16xf32>
    %cst_145 = arith.constant 0.000000e+00 : f32
    %452 = vector.broadcast %cst_145 : f32 to vector<16x16xf32>
    %453 = arith.select %352, %451, %452 : vector<16x16xi1>, vector<16x16xf32>
    %cst_146 = arith.constant dense<0.000000e+00> : vector<16xf32>
    %454 = vector.multi_reduction <add>, %453, %cst_146 [1] : vector<16x16xf32> to vector<16xf32>
    %455 = vector.shape_cast %454 : vector<16xf32> to vector<16x1xf32>
    %cst_147 = arith.constant 1.000000e-30 : f32
    %456 = vector.broadcast %cst_147 : f32 to vector<16x1xf32>
    %457 = arith.maximumf %455, %456 : vector<16x1xf32>
    %458 = vector.broadcast %457 : vector<16x1xf32> to vector<16x16xf32>
    %459 = arith.divf %453, %458 : vector<16x16xf32>
    %460 = vector.extract_strided_slice %353 {offsets = [0, 96], sizes = [16, 32], strides = [1, 1]} : vector<16x128xf32> to vector<16x32xf32>
    %cst_148 = arith.constant dense<0.000000e+00> : vector<16x32xf32>
    %461 = tpu.matmul %459, %460, %cst_148 {dimension_numbers = #tpu.dot_dimension_numbers<[1], [0], [0], [1], [0, 0, 1, 1], [], []>} : vector<16x16xf32>, vector<16x32xf32>, vector<16x32xf32> -> vector<16x32xf32>
    %462 = tpu.concatenate %380, %407, %434, %461 in 1 : vector<16x32xf32>, vector<16x32xf32>, vector<16x32xf32>, vector<16x32xf32> -> vector<16x128xf32>
    %463 = tpu.concatenate %120, %234, %348, %462 in 0 : vector<16x128xf32>, vector<16x128xf32>, vector<16x128xf32>, vector<16x128xf32> -> vector<64x128xf32>
    %cst_149 = arith.constant dense<0.000000e+00> : vector<64x32xf32>
    %464 = tpu.matmul %463, %6, %cst_149 {dimension_numbers = #tpu.dot_dimension_numbers<[1], [0], [0], [1], [0, 0, 1, 1], [], []>} : vector<64x128xf32>, vector<128x32xf32>, vector<64x32xf32> -> vector<64x32xf32>
    %c0_150 = arith.constant 0 : index
    %c0_151 = arith.constant 0 : index
    %465 = vector.load %arg6[%c0_150, %c0_151] : memref<1x32xf32, #tpu.memory_space<vmem>>, vector<1x32xf32>
    %466 = vector.broadcast %465 : vector<1x32xf32> to vector<64x32xf32>
    %467 = arith.addf %464, %466 : vector<64x32xf32>
    %468 = vector.extract_strided_slice %467 {offsets = [0, 0], sizes = [16, 32], strides = [1, 1]} : vector<64x32xf32> to vector<16x32xf32>
    %469 = vector.extract_strided_slice %467 {offsets = [16, 0], sizes = [16, 32], strides = [1, 1]} : vector<64x32xf32> to vector<16x32xf32>
    %470 = vector.extract_strided_slice %467 {offsets = [32, 0], sizes = [16, 32], strides = [1, 1]} : vector<64x32xf32> to vector<16x32xf32>
    %471 = vector.extract_strided_slice %467 {offsets = [48, 0], sizes = [16, 32], strides = [1, 1]} : vector<64x32xf32> to vector<16x32xf32>
    %472 = tpu.concatenate %468, %469, %470, %471 in 1 : vector<16x32xf32>, vector<16x32xf32>, vector<16x32xf32>, vector<16x32xf32> -> vector<16x128xf32>
    %c0_152 = arith.constant 0 : index
    %c0_153 = arith.constant 0 : index
    %473 = vector.load %arg7[%c0_152, %c0_153] : memref<16x128xf32, #tpu.memory_space<vmem>>, vector<16x128xf32>
    tpu.vector_store %arg7[%c0_152, %c0_153], %472 {strides = array<i32>} : memref<16x128xf32, #tpu.memory_space<vmem>>, vector<16x128xf32>,
    return
  }
  func.func @transform_0(%arg0: i32) -> (i32, i32) {
    %c0_i32 = arith.constant 0 : i32
    %c0_i32_0 = arith.constant 0 : i32
    return %arg0, %c0_i32 : i32, i32
  }
  func.func @transform_1(%arg0: i32) -> (i32, i32, i32) {
    %c0_i32 = arith.constant 0 : i32
    %c0_i32_0 = arith.constant 0 : i32
    %c0_i32_1 = arith.constant 0 : i32
    return %arg0, %c0_i32, %c0_i32_0 : i32, i32, i32
  }
  func.func @transform_2(%arg0: i32) -> (i32, i32) {
    %c0_i32 = arith.constant 0 : i32
    %c0_i32_0 = arith.constant 0 : i32
    %c0_i32_1 = arith.constant 0 : i32
    return %c0_i32, %c0_i32_0 : i32, i32
  }
  func.func @transform_3(%arg0: i32) -> (i32, i32) {
    %c0_i32 = arith.constant 0 : i32
    %c0_i32_0 = arith.constant 0 : i32
    %c0_i32_1 = arith.constant 0 : i32
    return %c0_i32, %c0_i32_0 : i32, i32
  }
  func.func @transform_4(%arg0: i32) -> (i32, i32) {
    %c0_i32 = arith.constant 0 : i32
    %c0_i32_0 = arith.constant 0 : i32
    %c0_i32_1 = arith.constant 0 : i32
    return %c0_i32, %c0_i32_0 : i32, i32
  }
  func.func @transform_5(%arg0: i32) -> (i32, i32) {
    %c0_i32 = arith.constant 0 : i32
    %c0_i32_0 = arith.constant 0 : i32
    %c0_i32_1 = arith.constant 0 : i32
    return %c0_i32, %c0_i32_0 : i32, i32
  }
  func.func @transform_6(%arg0: i32) -> (i32, i32) {
    %c0_i32 = arith.constant 0 : i32
    %c0_i32_0 = arith.constant 0 : i32
    return %c0_i32, %arg0 : i32, i32
  }
}

</mosaic_0001>

<bundles_post_ra>
// kernel: tpu_custom_call.1
= control target key start
LH: loop header
LB: loop body
LE: loop exit
PB: predicated region body
PF: predicated region fallthrough
CT: control target
= control target key end

     0   :  { %11 = vsyncpa [#allocation3], 0  ;;  %s5105_s0 = inlined_call_operand.vmem [shape: f32[128,32], index: 0, kind: input, shape index: {}]   ;;  %s5106_s1 = inlined_call_operand.vmem [shape: f32[8,16,16], index: 1, kind: input, shape index: {}]   ;;  %s5107_s2 = inlined_call_operand.vmem [shape: f32[32,128], index: 2, kind: input, shape index: {}]   ;;  %s5108_s3 = inlined_call_operand.vmem [shape: f32[128,8], index: 3, kind: input, shape index: {}]   ;;  %s5109_s4 = inlined_call_operand.vmem [shape: f32[128,32], index: 4, kind: input, shape index: {}]   ;;  %s5110_s5 = inlined_call_operand.vmem [shape: f32[1,32], index: 5, kind: input, shape index: {}]   ;;  %s5111_s6 = inlined_call_operand.hbm [shape: f32[16,256], index: 6, kind: output, shape index: {}]  }
   0x1   :  { %13 = vsyncpa [#allocation3 + $0x1], 0  ;;  %s3949_s21 = smov 0   ;;  %s3951_s22 = smov 0  }
   0x2   :  { %s3953_s23 = smov 0   ;;  %s3955_s24 = smov 0  }
   0x3 LB: > { %s3970_s25 = sadd.s32 4294967295, %s3899_s24   ;;  %s3161_s26 = sadd.s32 4294967294, %s3899_s24   ;;  %s3899_s24 = sphi %s3955_s24, %s5167_s24   ;;  %s3895_s23 = sphi %s3953_s23, %s5166_s23   ;;  %s3891_s22 = sphi %s3951_s22, %s5165_s22   ;;  %s3887_s21 = sphi %s3949_s21, %s5164_s21  }
   0x4   : > { %s3974_s27 = sadd.s32 1, %s3899_s24   ;;  %s162_s28 = sadd.s32 1, %s3895_s23 }
   0x5   : > { %s159_s29 = ssub.s32 %s3899_s24, %s3974_s27  ;;  %p172_p0 = scmp.ne.s32.totalorder %s3895_s23, %s3891_s22 }
   0x6   : > { %p160_p1 = scmp.eq.s32.totalorder %s159_s29, 0  ;;  %p173_p2 = scmp.eq.s32.totalorder %s3970_s25, 1 }
   0x7   : > { %p178_p3 = scmp.ne.s32.totalorder %s3891_s22, %s3887_s21  ;;  %p179_p4 = scmp.eq.s32.totalorder %s3161_s26, 1 }
   0x8   : > { %s3985_s30 = scalar_select %p160_p1, %s3895_s23, %s162_s28  }
   0x9   : > { %p3987_p5 = por %p173_p2, %p172_p0  ;;  %p3991_p6 = por %p179_p4, %p178_p3 }
   0xa   : > { %p3164_p7 = scmp.ge.s32.totalorder %s3899_s24, 1  ;;  %p228_p8 = scmp.lt.s32.totalorder %s3899_s24, 3 }
   0xc   : > { %p229_p9 = pnand %p3164_p7, %p228_p8 }
   0xe   : > { %232 = sbr.rel (%p229_p9) target bundleno = 1829 (0x725), region = 44 }
  0x13   : > { %v288_v0 = vld [vmem:[%s5107_s2 + $0x18] sm:$0xff]  ;;  %v287_v1 = vld [vmem:[%s5107_s2 + $0x10] sm:$0xff]  ;;  %s3166_s13 = sshll.u32 %s3970_s25, 3  ;;  %v286_v2 = vld [vmem:[%s5107_s2 + $0x8] sm:$0xff]  ;;  %vm289_vm0 = vcmask 261120   ;;  %s3901_s10 = smov 96  }
  0x14   : > { %3347 = vmatprep.subr.mxu1 %v288_v0  ;;  %p265_p10 = scmp.lt.s32.totalorder %s3166_s13, 15  ;;  %v285_v3 = vld [vmem:[%s5107_s2] sm:$0xff]  ;;  %v434_v4 = vld [vmem:[%s5108_s3 + $0x78] sm:$0xff]  ;;  %v433_v8 = vld [vmem:[%s5108_s3 + $0x70] sm:$0xff]  ;;  %s3903_s11 = smov 32   ;;  %v3904_v36 = vmov 6  }
  0x15   : > { %3348 = vmatpush3.msra.mxu1 %v288_v0  ;;  %v432_v10 = vld [vmem:[%s5108_s3 + $0x68] sm:$0xff]  ;;  %v431_v12 = vld [vmem:[%s5108_s3 + $0x60] sm:$0xff]  ;;  %v430_v14 = vld [vmem:[%s5108_s3 + $0x58] sm:$0xff]  ;;  %3619 = vset.pattern.permute.xlu1 %v3904_v36  ;;  %v3905_v37 = vmov 5   ;;  %v3906_v45 = vmov 7   ;;  %v3907_v48 = vmov 4  }
  0x16   : > { %3349 = vmatprep.subr.mxu1 %v287_v1  ;;  %s5169_s13 = smov (!%p265_p10, %s3166_s13), 15  ;;  %v429_v16 = vld [vmem:[%s5108_s3 + $0x50] sm:$0xff]  ;;  %v428_v18 = vld [vmem:[%s5108_s3 + $0x48] sm:$0xff]  ;;  %v427_v19 = vld [vmem:[%s5108_s3 + $0x40] sm:$0xff]  ;;  %3622 = vset.pattern.permute.xlu0 %v3905_v37  ;;  %s3168_s12 = sshll.u32 %s3970_s25, 2  ;;  %vm616_vm2 = vcmask 130048  }
  0x17   : > { %3350 = vmatpush3.msra.mxu1 %v287_v1  ;;  %s3167_s18 = sshll.u32 %s5169_s13, 3  ;;  %v426_v20 = vld [vmem:[%s5108_s3 + $0x38] sm:$0xff]  ;;  %v425_v21 = vld [vmem:[%s5108_s3 + $0x30] sm:$0xff]  ;;  %v424_v22 = vld [vmem:[%s5108_s3 + $0x28] sm:$0xff]  ;;  %p271_p11 = scmp.lt.s32.totalorder %s3168_s12, 7 }
  0x18   : > { %3351 = vmatprep.subr.mxu1 %v286_v2  ;;  %s4013_s26 = scalar_lea.vmem %s5105_s0, %s3167_s18  ;;  %v423_v23 = vld [vmem:[%s5108_s3 + $0x20] sm:$0xff]  ;;  %v422_v24 = vld [vmem:[%s5108_s3 + $0x18] sm:$0xff]  ;;  %v421_v25 = vld [vmem:[%s5108_s3 + $0x10] sm:$0xff]  ;;  %s3908_s17 = smov 112  }
  0x19   : > { %3352 = vmatpush3.msra.mxu1 %v286_v2  ;;  %v277_v5 = vld [vmem:[%s4013_s26] sm:$0xff]  ;;  %v278_v6 = vld [vmem:[%s4013_s26 + $0x8] sm:$0xff]  ;;  %v279_v7 = vld [vmem:[%s4013_s26 + $0x10] sm:$0xff]  ;;  %s5171_s12 = smov (!%p271_p11, %s3168_s12), 7  ;;  %s3909_s18 = smov 80  }
  0x1a   : > { %3353 = vmatprep.subr.mxu1 %v285_v3  ;;  %3355 = vmatprep.mubr.msk.f32.mxu1 %vm289_vm0, %v277_v5  ;;  %v280_v9 = vld [vmem:[%s4013_s26 + $0x18] sm:$0xff]  ;;  %v281_v11 = vld [vmem:[%s4013_s26 + $0x20] sm:$0xff]  ;;  %v282_v13 = vld [vmem:[%s4013_s26 + $0x28] sm:$0xff]  ;;  %s3222_s13 = sshll.u32 %s5171_s12, 4  ;;  %s3219_s20 = sshll.u32 %s3970_s25, 7 }
  0x1b   : > { %3354 = vmatpush3.msra.mxu1 %v285_v3  ;;  %v283_v15 = vld [vmem:[%s4013_s26 + $0x30] sm:$0xff]  ;;  %v284_v17 = vld [vmem:[%s4013_s26 + $0x38] sm:$0xff]  ;;  %v420_v26 = vld [vmem:[%s5108_s3 + $0x8] sm:$0xff]  ;;  %s3902_s26 = smov 64   ;;  %s4234_s16 = scalar_lea.vmem %s5106_s1, %s3222_s13 }
  0x1c   : > { %3356 = vmatmul.mubr.msk.f32.vlgmr.msra.gmra.mxu1 %vm289_vm0, %v278_v6  ;;  %3367 = vmatprep.subr.mxu1 %v434_v4  ;;  %v419_v27 = vld [vmem:[%s5108_s3] sm:$0xff]  ;;  %s5061_s25 = scalar_lea.hbm %s5111_s6, %s3219_s20  ;;  %s3910_s9 = smov [#allocation2]  }
  0x1d   : > { %3358 = vmatprep.mubr.msk.f32.mxu1 %vm289_vm0, %v279_v7  ;;  %3368 = vmatpush3.msra.mxu1 %v434_v4  ;;  %s3843_s12 = sshll.u32 %s3910_s9, 4  ;;  %s3844_s12 = int_to_ptr.vmem [resolvable:$false] %s3843_s12 }
  0x1e   : > { %3369 = vmatprep.subr.mxu1 %v433_v8  ;;  %s3845_s13 = scalar_lea.vmem %s3844_s12, 512 }
  0x1f   : > { %3370 = vmatpush3.msra.mxu1 %v433_v8 }
  0x20   : > { %3359 = vmatmul.mubr.msk.f32.gmra.mxu1 %vm289_vm0, %v280_v9  ;;  %3371 = vmatprep.subr.mxu1 %v432_v10 }
  0x21   : > { %3361 = vmatprep.mubr.msk.f32.mxu1 %vm289_vm0, %v281_v11  ;;  %3372 = vmatpush3.msra.mxu1 %v432_v10 }
  0x22   : > { %3373 = vmatprep.subr.mxu1 %v431_v12 }
  0x23   : > { %3374 = vmatpush3.msra.mxu1 %v431_v12 }
  0x24   : > { %3362 = vmatmul.mubr.msk.f32.gmra.mxu1 %vm289_vm0, %v282_v13  ;;  %3375 = vmatprep.subr.mxu1 %v430_v14 }
  0x25   : > { %3364 = vmatprep.mubr.msk.f32.mxu1 %vm289_vm0, %v283_v15  ;;  %3376 = vmatpush3.msra.mxu1 %v430_v14 }
  0x26   : > { %3377 = vmatprep.subr.mxu1 %v429_v16 }
  0x27   : > { %3378 = vmatpush3.msra.mxu1 %v429_v16 }
  0x28   : > { %3365 = vmatmul.mubr.msk.f32.gmra.mxu1 %vm289_vm0, %v284_v17  ;;  %3379 = vmatprep.subr.mxu1 %v428_v18  ;;  %v602_v17 = vlaneseq }
  0x29   : > { %3380 = vmatpush3.msra.mxu1 %v428_v18 }
  0x2a   : > { %3381 = vmatprep.subr.mxu1 %v427_v19 }
  0x2b   : > { %3382 = vmatpush3.msra.mxu1 %v427_v19 }
  0x2c   : > { %3383 = vmatprep.subr.mxu1 %v426_v20 }
  0x2d   : > { %3384 = vmatpush3.msra.mxu1 %v426_v20  ;;  %v603_v20 = vshrl.u32 %v602_v17, 7 }
  0x2e   : > { %3385 = vmatprep.subr.mxu1 %v425_v21 }
  0x2f   : > { %3386 = vmatpush3.msra.mxu1 %v425_v21 }
  0x30   : > { %3387 = vmatprep.subr.mxu1 %v424_v22 }
  0x31   : > { %3388 = vmatpush3.msra.mxu1 %v424_v22 }
  0x32   : > { %3389 = vmatprep.subr.mxu1 %v423_v23 }
  0x33   : > { %3390 = vmatpush3.msra.mxu1 %v423_v23  ;;  %v604_v23 = vsub.s32 0, %v603_v20 }
  0x34   : > { %3391 = vmatprep.subr.mxu1 %v422_v24 }
  0x35   : > { %3392 = vmatpush3.msra.mxu1 %v422_v24  ;;  %v871_v24 = vsub.s32 2, %v603_v20 }
  0x36   : > { %3393 = vmatprep.subr.mxu1 %v421_v25 }
  0x37   : > { %3394 = vmatpush3.msra.mxu1 %v421_v25  ;;  %v1006_v25 = vsub.s32 3, %v603_v20 }
  0x38   : > { %3395 = vmatprep.subr.mxu1 %v420_v26 }
  0x39   : > { %3396 = vmatpush3.msra.mxu1 %v420_v26  ;;  %v734_v26 = vsub.s32 1, %v603_v20 }
  0x3a   : > { %3397 = vmatprep.subr.mxu1 %v419_v27 }
  0x3b   : > { %3398 = vmatpush3.msra.mxu1 %v419_v27 }
  0xdc   : > { %v3357_v28 = vpop.f32.mrf.mxu1 }
  0xdd   : > { %776 = vrot.lane.b32.xlu1 %v3357_v28, %s3901_s10  ;;  %911 = vrot.lane.b32.xlu0 %v3357_v28, %s3902_s26 }
  0xde   : > { %3411 = vmatprep.subr.mxu1 %v3357_v28  ;;  %v380_v29 = vpop.f32.mrf.mxu1 }
  0xdf   : > { %3399 = vmatprep.mubr.f32.mxu1 %v380_v29 }
  0xe0   : > { %v4081_v30 = vpop.f32.mrf.mxu1  ;;  %3400 = vmatmul.mubr.f32.vlgmr.msra.gmra.mxu1 %v3357_v28 }
  0xe1   : > { %3412 = vmatpush3.msra.mxu1 %v3357_v28  ;;  %1046 = vrot.lane.b32.xlu0 %v3357_v28, %s3903_s11 }
  0xe2   : > { %909 = vrot.lane.b32.xlu1 %v380_v29, %s3902_s26  ;;  %3413 = vmatprep.subr.mxu1 %v380_v29  ;;  %v4085_v31 = vpop.f32.mrf.mxu1 }
  0xe3   : > { %3414 = vmatpush3.msra.mxu1 %v380_v29  ;;  %3402 = vmatprep.mubr.f32.mxu1 %v4085_v31 }
  0xe4   : > { %v4088_v32 = vpop.f32.mrf.mxu1  ;;  %3403 = vmatmul.mubr.f32.gmra.mxu1 %v4081_v30 }
  0xe5   : > { %5132 = vst [vmem:[#allocation5_spill] sm:$0xff] %v4088_v32  ;;  %1359 = vrot.lane.b32.xlu0 %v4081_v30, %s3901_s10 }
  0xe6   : > { %1044 = vrot.lane.b32.xlu1 %v380_v29, %s3903_s11  ;;  %v4094_v33 = vpop.f32.mrf.mxu1 }
  0xe7   : > { %5133 = vst [vmem:[#allocation6_spill] sm:$0xff] %v4094_v33  ;;  %3405 = vmatprep.mubr.f32.mxu1 %v4094_v33 }
  0xe8   : > { %3406 = vmatmul.mubr.f32.gmra.mxu1 %v4088_v32  ;;  %v4098_v34 = vpop.f32.mrf.mxu1 }
  0xe9   : > { %1498 = vrot.lane.b32.xlu0 %v4081_v30, %s3902_s26 }
  0xea   : > { %774 = vrot.lane.b32.xlu1 %v380_v29, %s3901_s10  ;;  %v4103_v35 = vpop.f32.mrf.mxu1 }
  0xeb   : > { %3408 = vmatprep.mubr.f32.mxu1 %v4103_v35 }
  0xec   : > { %3409 = vmatmul.mubr.f32.gmra.mxu1 %v4098_v34 }
  0xed   : > { %1496 = vrot.lane.b32.xlu0 %v4085_v31, %s3902_s26 }
  0xee   : > { %1637 = vrot.lane.b32.xlu1 %v4081_v30, %s3903_s11 }
  0xf1   : > { %1948 = vrot.lane.b32.xlu0 %v4088_v32, %s3901_s10 }
  0xf2   : > { %1357 = vrot.lane.b32.xlu1 %v4085_v31, %s3901_s10 }
  0xf5   : > { %2087 = vrot.lane.b32.xlu0 %v4088_v32, %s3902_s26 }
  0xf6   : > { %1635 = vrot.lane.b32.xlu1 %v4085_v31, %s3903_s11 }
  0xf9   : > { %2085 = vrot.lane.b32.xlu0 %v4094_v33, %s3902_s26 }
  0xfa   : > { %2226 = vrot.lane.b32.xlu1 %v4088_v32, %s3903_s11 }
  0xfd   : > { %2537 = vrot.lane.b32.xlu0 %v4098_v34, %s3901_s10 }
  0xfe   : > { %1946 = vrot.lane.b32.xlu1 %v4094_v33, %s3901_s10 }
 0x102   : > { %2224 = vrot.lane.b32.xlu1 %v4094_v33, %s3903_s11 }
 0x106   : > { %2535 = vrot.lane.b32.xlu1 %v4103_v35, %s3901_s10 }
 0x14f   : > { %v4133_v38 = vpop.permute.xlu1 %776  ;;  %v912_v39 = vpop.permute.xlu0 %911 }
 0x150   : > { %3418 = vmatprep.subr.mxu1 %v4133_v38  ;;  %3425 = vmatprep.subr.mxu0 %v912_v39 }
 0x151   : > { %3426 = vmatpush3.msra.mxu0 %v912_v39  ;;  %v4245_v39 = vld [vmem:[%s4234_s16 + $0x8] sm:$0xff] }
 0x152   : > { %vm591_vm1 = vcmp.gt.f32.partialorder %v4245_v39, 0.0 }
 0x153   : > { %v4136_v41 = vpop.permute.xlu0 %1046 }
 0x154   : > { %v910_v40 = vpop.permute.xlu1 %909 }
 0x155   : > { %3427 = vmatprep.subr.mxu0 %v910_v40 }
 0x156   : > { %3428 = vmatpush3.msra.mxu0 %v910_v40  ;;  %v4248_v40 = vld [vmem:[%s4234_s16] sm:$0xff] }
 0x157   : > { %3432 = vmatprep.subr.mxu0 %v4136_v41  ;;  %v4179_v58 = vpop.permute.xlu0 %1359  ;;  %vm590_vm3 = vcmp.gt.f32.partialorder %v4248_v40, 0.0 }
 0x158   : > { %v4160_v52 = vpop.permute.xlu1 %1044  ;;  %5138 = vst [vmem:[#allocation11_spill] sm:$0xff] %v4179_v58 }
 0x15b   : > { %v4185_v60 = vpop.permute.xlu0 %1498 }
 0x15c   : > { %v4163_v53 = vpop.permute.xlu1 %774  ;;  %5140 = vst [vmem:[#allocation13_spill] sm:$0xff] %v4185_v60 }
 0x15f   : > { %v4191_v62 = vpop.permute.xlu0 %1496 }
 0x160   : > { %v4167_v54 = vpop.permute.xlu1 %1637  ;;  %5142 = vst [vmem:[#allocation15_spill] sm:$0xff] %v4191_v62 }
 0x161   : > { %5134 = vst [vmem:[#allocation7_spill] sm:$0xff] %v4167_v54 }
 0x163   : > { %v4197_v0 = vpop.permute.xlu0 %1948 }
 0x164   : > { %v4170_v55 = vpop.permute.xlu1 %1357  ;;  %5144 = vst [vmem:[#allocation17_spill] sm:$0xff] %v4197_v0 }
 0x165   : > { %5135 = vst [vmem:[#allocation8_spill] sm:$0xff] %v4170_v55 }
 0x167   : > { %v4202_v2 = vpop.permute.xlu0 %2087 }
 0x168   : > { %v4174_v56 = vpop.permute.xlu1 %1635  ;;  %5145 = vst [vmem:[#allocation18_spill] sm:$0xff] %v4202_v2 }
 0x169   : > { %5136 = vst [vmem:[#allocation9_spill] sm:$0xff] %v4174_v56 }
 0x16b   : > { %v4204_v5 = vpop.permute.xlu0 %2085 }
 0x16c   : > { %v4177_v57 = vpop.permute.xlu1 %2226  ;;  %5146 = vst [vmem:[#allocation19_spill] sm:$0xff] %v4204_v5 }
 0x16d   : > { %5137 = vst [vmem:[#allocation10_spill] sm:$0xff] %v4177_v57 }
 0x16f   : > { %v4206_v7 = vpop.permute.xlu0 %2537 }
 0x170   : > { %v4182_v59 = vpop.permute.xlu1 %1946  ;;  %5147 = vst [vmem:[#allocation20_spill] sm:$0xff] %v4206_v7 }
 0x171   : > { %5139 = vst [vmem:[#allocation12_spill] sm:$0xff] %v4182_v59 }
 0x174   : > { %v4187_v61 = vpop.permute.xlu1 %2224 }
 0x175   : > { %5141 = vst [vmem:[#allocation14_spill] sm:$0xff] %v4187_v61 }
 0x178   : > { %v4193_v63 = vpop.permute.xlu1 %2535 }
 0x179   : > { %5143 = vst [vmem:[#allocation16_spill] sm:$0xff] %v4193_v63 }
 0x1a0   : > { %v3401_v42 = vpop.f32.mrf.mxu1 }
 0x1a1   : > { %729 = vperm.xlu0 %3622, %v3401_v42   ;;  %866 = vperm.xlu1 %3619, %v3401_v42  }
 0x1a2   : > { %v501_v43 = vpop.f32.mrf.mxu1 }
 0x1a4   : > { %v3404_v44 = vpop.f32.mrf.mxu1 }
 0x1a5   : > { %3624 = vset.pattern.permute.xlu0 %v3906_v45  ;;  %3620 = vset.pattern.permute.xlu1 %v3906_v45 }
 0x1a6   : > { %1001 = vperm.xlu1 %3620, %v3401_v42   ;;  %997 = vperm.xlu0 %3624, %v501_v43   ;;  %v511_v46 = vpop.f32.mrf.mxu1 }
 0x1a8   : > { %v3407_v47 = vpop.f32.mrf.mxu1 }
 0x1aa   : > { %3621 = vset.pattern.permute.xlu1 %v3907_v48  ;;  %3625 = vset.pattern.permute.xlu0 %v3907_v48  ;;  %v521_v49 = vpop.f32.mrf.mxu1 }
 0x1ab   : > { %599 = vperm.xlu1 %3621, %v3401_v42   ;;  %594 = vperm.xlu0 %3625, %v501_v43  }
 0x1ac   : > { %v3410_v50 = vpop.f32.mrf.mxu1 }
 0x1ae   : > { %v4146_v51 = vpop.f32.mrf.mxu1 }
 0x1af   : > { %3623 = vset.pattern.permute.xlu1 %v3904_v36  ;;  %1759 = vperm.xlu0 %3625, %v521_v49  }
 0x1b0   : > { %862 = vperm.xlu1 %3623, %v501_v43  }
 0x1b3   : > { %3645 = vset.pattern.permute.xlu0 %v3906_v45 }
 0x1b4   : > { %3626 = vset.pattern.permute.xlu1 %v3905_v37  ;;  %2766 = vperm.xlu0 %3645, %v3410_v50  }
 0x1b5   : > { %725 = vperm.xlu1 %3626, %v501_v43  }
 0x1b8   : > { %3648 = vset.pattern.permute.xlu0 %v3904_v36 }
 0x1b9   : > { %3627 = vset.pattern.permute.xlu1 %v3907_v48  ;;  %2623 = vperm.xlu0 %3648, %v4146_v51  }
 0x1ba   : > { %1175 = vperm.xlu1 %3627, %v3404_v44  }
 0x1be   : > { %3628 = vset.pattern.permute.xlu1 %v3905_v37 }
 0x1bf   : > { %1308 = vperm.xlu1 %3628, %v3404_v44  }
 0x1c3   : > { %3629 = vset.pattern.permute.xlu1 %v3904_v36 }
 0x1c4   : > { %1449 = vperm.xlu1 %3629, %v3404_v44  }
 0x1c8   : > { %3630 = vset.pattern.permute.xlu1 %v3906_v45 }
 0x1c9   : > { %1588 = vperm.xlu1 %3630, %v3404_v44  }
 0x1cd   : > { %3631 = vset.pattern.permute.xlu1 %v3907_v48 }
 0x1ce   : > { %1170 = vperm.xlu1 %3631, %v511_v46  }
 0x1d2   : > { %3632 = vset.pattern.permute.xlu1 %v3905_v37 }
 0x1d3   : > { %1304 = vperm.xlu1 %3632, %v511_v46  }
 0x1d7   : > { %3633 = vset.pattern.permute.xlu1 %v3904_v36  ;;  %540 = vxpose.xlu0.b32.start [1/8] (short) (narrow) %v501_v43, 8 }
 0x1d8   : > { %1445 = vperm.xlu1 %3633, %v511_v46  }
 0x1db   : > { %541 = vxpose.xlu0.b32.cont [2/8] (short) (narrow) %v3401_v42, 8 }
 0x1dc   : > { %3634 = vset.pattern.permute.xlu1 %v3906_v45 }
 0x1dd   : > { %1584 = vperm.xlu1 %3634, %v511_v46  }
 0x1df   : > { %542 = vxpose.xlu0.b32.cont [3/8] (short) (narrow) %v511_v46, 8 }
 0x1e1   : > { %3635 = vset.pattern.permute.xlu1 %v3907_v48 }
 0x1e2   : > { %1764 = vperm.xlu1 %3635, %v3407_v47  }
 0x1e3   : > { %543 = vxpose.xlu0.b32.cont [4/8] (short) (narrow) %v3404_v44, 8 }
 0x1e6   : > { %3636 = vset.pattern.permute.xlu1 %v3905_v37 }
 0x1e7   : > { %1897 = vperm.xlu1 %3636, %v3407_v47   ;;  %544 = vxpose.xlu0.b32.cont [5/8] (short) (narrow) %v521_v49, 8 }
 0x1eb   : > { %3637 = vset.pattern.permute.xlu1 %v3904_v36  ;;  %545 = vxpose.xlu0.b32.cont [6/8] (short) (narrow) %v3407_v47, 8 }
 0x1ec   : > { %2038 = vperm.xlu1 %3637, %v3407_v47  }
 0x1ef   : > { %546 = vxpose.xlu0.b32.cont [7/8] (short) (narrow) %v4146_v51, 8 }
 0x1f0   : > { %3638 = vset.pattern.permute.xlu1 %v3906_v45 }
 0x1f1   : > { %2177 = vperm.xlu1 %3638, %v3407_v47  }
 0x1f3   : > { %547 = vxpose.xlu0.b32.end [8/8] (short) (narrow) %v3410_v50, 8 }
 0x1f5   : > { %3639 = vset.pattern.permute.xlu1 %v3905_v37 }
 0x1f6   : > { %1893 = vperm.xlu1 %3639, %v521_v49  }
 0x1fa   : > { %3640 = vset.pattern.permute.xlu1 %v3904_v36 }
 0x1fb   : > { %2034 = vperm.xlu1 %3640, %v521_v49  }
 0x1ff   : > { %3641 = vset.pattern.permute.xlu1 %v3906_v45 }
 0x200   : > { %2173 = vperm.xlu1 %3641, %v521_v49  }
 0x204   : > { %3642 = vset.pattern.permute.xlu1 %v3907_v48 }
 0x205   : > { %2353 = vperm.xlu1 %3642, %v3410_v50  }
 0x209   : > { %3643 = vset.pattern.permute.xlu1 %v3905_v37 }
 0x20a   : > { %2486 = vperm.xlu1 %3643, %v3410_v50  }
 0x20e   : > { %3644 = vset.pattern.permute.xlu1 %v3904_v36 }
 0x20f   : > { %2627 = vperm.xlu1 %3644, %v3410_v50  }
 0x213   : > { %3646 = vset.pattern.permute.xlu1 %v3907_v48 }
 0x214   : > { %2348 = vperm.xlu1 %3646, %v4146_v51  }
 0x218   : > { %3647 = vset.pattern.permute.xlu1 %v3905_v37 }
 0x219   : > { %2482 = vperm.xlu1 %3647, %v4146_v51  }
 0x21c   : > { %v867_v1 = vpop.permute.xlu1 %866  ;;  %3710 = vset.pattern.permute.xlu0 %v3906_v45  ;;  %v730_v9 = vpop.permute.xlu0 %729 }
 0x21d   : > { %3649 = vset.pattern.permute.xlu1 %v3906_v45 }
 0x21e   : > { %2762 = vperm.xlu1 %3649, %v4146_v51  }
 0x221   : > { %v1002_v3 = vpop.permute.xlu1 %1001  ;;  %v998_v11 = vpop.permute.xlu0 %997 }
 0x226   : > { %v600_v4 = vpop.permute.xlu1 %599  ;;  %v4214_v13 = vpop.permute.xlu0 %594 }
 0x22a   : > { %v4218_v15 = vpop.permute.xlu0 %1759 }
 0x22b   : > { %v863_v6 = vpop.permute.xlu1 %862 }
 0x22f   : > { %v4223_v18 = vpop.permute.xlu0 %2766 }
 0x230   : > { %v4208_v8 = vpop.permute.xlu1 %725 }
 0x234   : > { %v4229_v22 = vpop.permute.xlu0 %2623 }
 0x235   : > { %v4210_v10 = vpop.permute.xlu1 %1175 }
 0x23a   : > { %v4212_v12 = vpop.permute.xlu1 %1308 }
 0x23f   : > { %v4216_v14 = vpop.permute.xlu1 %1449 }
 0x244   : > { %v4221_v16 = vpop.permute.xlu1 %1588 }
 0x249   : > { %v4225_v19 = vpop.permute.xlu1 %1170 }
 0x24e   : > { %v4227_v21 = vpop.permute.xlu1 %1304 }
 0x253   : > { %v4236_v27 = vpop.permute.xlu1 %1445  ;;  %v556_v28 = vpop.trf.xlu0 }
 0x254   : > { %v4238_v29 = vrot.slane %v556_v28, %v604_v23  ;;  %v4240_v36 = vrot.slane %v556_v28, %v871_v24  ;;  %v4242_v37 = vrot.slane %v556_v28, %v1006_v25  ;;  %v4250_v42 = vrot.slane %v556_v28, %v734_v26 }
 0x256   : > { %v1009_v43 = vadd.f32 %v4242_v37, %v1002_v3  ;;  %v874_v44 = vadd.f32 %v4240_v36, %v867_v1  ;;  %v873_v45 = vadd.f32 %v4240_v36, %v863_v6  ;;  %v607_v46 = vadd.f32 %v4238_v29, %v600_v4 }
 0x257   : > { %v1008_v47 = vadd.f32 %v4242_v37, %v998_v11  ;;  %v737_v1 = vadd.f32 %v4250_v42, %v730_v9 }
 0x258   : > { %v1585_v48 = vpop.permute.xlu1 %1584  ;;  %vm1011_vm4 = vcmp.ge.f32.partialorder %v1009_v43, 0.0  ;;  %v1013_v49 = vmul.f32 0.2, %v1009_v43  ;;  %vm876_vm5 = vcmp.ge.f32.partialorder %v874_v44, 0.0  ;;  %v878_v50 = vmul.f32 0.2, %v874_v44 }
 0x259   : > { %vm875_vm6 = vcmp.ge.f32.partialorder %v873_v45, 0.0  ;;  %v877_v51 = vmul.f32 0.2, %v873_v45  ;;  %vm609_vm7 = vcmp.ge.f32.partialorder %v607_v46, 0.0  ;;  %v611_v4 = vmul.f32 0.2, %v607_v46 }
 0x25a   : > { %v1015_v3 = vsel %vm1011_vm4, %v1009_v43, %v1013_v49  ;;  %v880_v6 = vsel %vm876_vm5, %v874_v44, %v878_v50  ;;  %vm1010_vm8 = vcmp.ge.f32.partialorder %v1008_v47, 0.0  ;;  %v1012_v23 = vmul.f32 0.2, %v1008_v47 }
 0x25b   : > { %v4262_v17 = vsel %vm591_vm1, %v1015_v3, -1e+30  ;;  %v4266_v11 = vsel %vm591_vm1, %v880_v6, -1e+30  ;;  %v879_v20 = vsel %vm875_vm6, %v873_v45, %v877_v51  ;;  %v613_v25 = vsel %vm609_vm7, %v607_v46, %v611_v4 }
 0x25c   : > { %v1021_v24 = vsel %vm616_vm2, %v4262_v17, -inf  ;;  %v886_v9 = vsel %vm616_vm2, %v4266_v11, -inf  ;;  %v4276_v28 = vsel %vm590_vm3, %v879_v20, -1e+30  ;;  %v4280_v43 = vsel %vm591_vm1, %v613_v25, -1e+30 }
 0x25d   : > { %v4272_v26 = vpop.permute.xlu1 %1764  ;;  %1022 = vmax.xlane.f32.xlu0 %v1021_v24  ;;  %887 = vmax.xlane.f32.xlu1 %v886_v9  ;;  %vm739_vm9 = vcmp.ge.f32.partialorder %v737_v1, 0.0  ;;  %v1014_v44 = vsel %vm1010_vm8, %v1008_v47, %v1012_v23  ;;  %v741_v45 = vmul.f32 0.2, %v737_v1  ;;  %v883_v49 = vsel %vm616_vm2, %v4276_v28, -inf }
 0x25e   : > { %v620_v46 = vsel %vm616_vm2, %v4280_v43, -inf  ;;  %v4288_v51 = vsel %vm590_vm3, %v1014_v44, -1e+30  ;;  %v1179_v23 = vadd.f32 %v4210_v10, %v4238_v29  ;;  %v1312_v25 = vadd.f32 %v4212_v12, %v4250_v42 }
 0x25f   : > { %v743_v50 = vsel %vm739_vm9, %v737_v1, %v741_v45  ;;  %v1018_v47 = vsel %vm616_vm2, %v4288_v51, -inf  ;;  %v1311_v44 = vadd.f32 %v4227_v21, %v4250_v42  ;;  %v1592_v21 = vadd.f32 %v4221_v16, %v4242_v37 }
 0x260   : > { %v4292_v3 = vsel %vm591_vm1, %v743_v50, -1e+30  ;;  %v1183_v9 = vmul.f32 0.2, %v1179_v23  ;;  %vm1181_vm10 = vcmp.ge.f32.partialorder %v1179_v23, 0.0  ;;  %vm1314_vm11 = vcmp.ge.f32.partialorder %v1312_v25, 0.0 }
 0x261   : > { %884 = vmax.xlane.f32.xlu0 %v883_v49  ;;  %621 = vmax.xlane.f32.xlu1 %v620_v46  ;;  %v749_v4 = vsel %vm616_vm2, %v4292_v3, -inf  ;;  %v1316_v49 = vmul.f32 0.2, %v1312_v25  ;;  %v1453_v46 = vadd.f32 %v4216_v14, %v4240_v36  ;;  %v1315_v10 = vmul.f32 0.2, %v1311_v44 }
 0x262   : > { %v4294_v6 = vpop.permute.xlu1 %1897  ;;  %v1185_v45 = vsel %vm1181_vm10, %v1179_v23, %v1183_v9  ;;  %vm1313_vm12 = vcmp.ge.f32.partialorder %v1311_v44, 0.0  ;;  %v1591_v23 = vadd.f32 %v1585_v48, %v4242_v37  ;;  %v1596_v7 = vmul.f32 0.2, %v1592_v21 }
 0x263   : > { %v1318_v12 = vsel %vm1314_vm11, %v1312_v25, %v1316_v49  ;;  %v1317_v14 = vsel %vm1313_vm12, %v1311_v44, %v1315_v10  ;;  %vm1455_vm13 = vcmp.ge.f32.partialorder %v1453_v46, 0.0  ;;  %vm1594_vm15 = vcmp.ge.f32.partialorder %v1592_v21, 0.0 }
 0x264   : > { %v1595_v25 = vmul.f32 0.2, %v1591_v23  ;;  %v1767_v16 = vadd.f32 %v4218_v15, %v4238_v29  ;;  %vm1593_vm4 = vcmp.ge.f32.partialorder %v1591_v23, 0.0  ;;  %v1598_v44 = vsel %vm1594_vm15, %v1592_v21, %v1596_v7 }
 0x265   : > { %1019 = vmax.xlane.f32.xlu0 %v1018_v47  ;;  %750 = vmax.xlane.f32.xlu1 %v749_v4  ;;  %v1452_v47 = vadd.f32 %v4236_v27, %v4240_v36  ;;  %v1457_v4 = vmul.f32 0.2, %v1453_v46 }
 0x266   : > { %v1771_v10 = vmul.f32 0.2, %v1767_v16  ;;  %vm1769_vm5 = vcmp.ge.f32.partialorder %v1767_v16, 0.0 }
 0x267   : > { %v4300_v1 = vpop.permute.xlu1 %2038  ;;  %v1456_v9 = vmul.f32 0.2, %v1452_v47  ;;  %vm1454_vm14 = vcmp.ge.f32.partialorder %v1452_v47, 0.0 }
 0x268   : > { %v1773_v15 = vsel %vm1769_vm5, %v1767_v16, %v1771_v10  ;;  %v606_v10 = vadd.f32 %v4238_v29, %v4214_v13 }
 0x269   : > { %v1458_v27 = vsel %vm1454_vm14, %v1452_v47, %v1456_v9 }
 0x26a   : > { %vm608_vm12 = vcmp.ge.f32.partialorder %v606_v10, 0.0 }
 0x26c   : > { %v4302_v20 = vpop.permute.xlu1 %2177 }
 0x271   : > { %v1894_v24 = vpop.permute.xlu1 %1893 }
 0x272   : > { %v1900_v49 = vadd.f32 %v1894_v24, %v4250_v42 }
 0x274   : > { %vm1902_vm6 = vcmp.ge.f32.partialorder %v1900_v49, 0.0 }
 0x276   : > { %v2035_v50 = vpop.permute.xlu1 %2034  ;;  %1190 = vrot.lane.b32.xlu1 %v1185_v45, %s3908_s17  ;;  %v1459_v45 = vsel %vm1455_vm13, %v1453_v46, %v1457_v4  ;;  %v1597_v46 = vsel %vm1593_vm4, %v1591_v23, %v1595_v25  ;;  %v1904_v4 = vmul.f32 0.2, %v1900_v49 }
 0x278   : > { %v1906_v24 = vsel %vm1902_vm6, %v1900_v49, %v1904_v4  ;;  %v2630_v49 = vadd.f32 %v4229_v22, %v4240_v36  ;;  %v736_v22 = vadd.f32 %v4250_v42, %v4208_v8 }
 0x27a   : > { %1323 = vrot.lane.b32.xlu1 %v1318_v12, %s3908_s17  ;;  %v2041_v12 = vadd.f32 %v2035_v50, %v4240_v36  ;;  %vm2632_vm11 = vcmp.ge.f32.partialorder %v2630_v49, 0.0  ;;  %v740_v13 = vmul.f32 0.2, %v736_v22  ;;  %vm738_vm14 = vcmp.ge.f32.partialorder %v736_v22, 0.0 }
 0x27b   : > { %v2174_v63 = vpop.permute.xlu1 %2173  ;;  %1321 = vrot.lane.b32.xlu0 %v1317_v14, %s3908_s17 }
 0x27c   : > { %v2180_v7 = vadd.f32 %v2174_v63, %v4242_v37  ;;  %v2045_v14 = vmul.f32 0.2, %v2041_v12  ;;  %vm2043_vm7 = vcmp.ge.f32.partialorder %v2041_v12, 0.0 }
 0x27e   : > { %1464 = vrot.lane.b32.xlu1 %v1459_v45, %s3908_s17  ;;  %v2047_v23 = vsel %vm2043_vm7, %v2041_v12, %v2045_v14  ;;  %v2184_v9 = vmul.f32 0.2, %v2180_v7  ;;  %vm2182_vm8 = vcmp.ge.f32.partialorder %v2180_v7, 0.0 }
 0x27f   : > { %1462 = vrot.lane.b32.xlu0 %v1458_v27, %s3908_s17 }
 0x280   : > { %v4324_v48 = vpop.permute.xlu1 %2353  ;;  %v2186_v27 = vsel %vm2182_vm8, %v2180_v7, %v2184_v9  ;;  %v2634_v7 = vmul.f32 0.2, %v2630_v49 }
 0x282   : > { %1603 = vrot.lane.b32.xlu1 %v1598_v44, %s3908_s17  ;;  %v2636_v14 = vsel %vm2632_vm11, %v2630_v49, %v2634_v7 }
 0x283   : > { %1601 = vrot.lane.b32.xlu0 %v1597_v46, %s3908_s17 }
 0x285   : > { %v4329_v47 = vpop.permute.xlu1 %2486 }
 0x287   : > { %1777 = vrot.lane.b32.xlu0 %v1773_v15, %s3901_s10 }
 0x28a   : > { %v4334_v21 = vpop.permute.xlu1 %2627 }
 0x28b   : > { %1910 = vrot.lane.b32.xlu0 %v1906_v24, %s3901_s10  ;;  %v610_v24 = vmul.f32 0.2, %v606_v10 }
 0x28d   : > { %v612_v9 = vsel %vm608_vm12, %v606_v10, %v610_v24 }
 0x28f   : > { %2051 = vrot.lane.b32.xlu0 %v2047_v23, %s3901_s10  ;;  %v2349_v45 = vpop.permute.xlu1 %2348 }
 0x290   : > { %v2356_v50 = vadd.f32 %v2349_v45, %v4238_v29 }
 0x292   : > { %v2360_v25 = vmul.f32 0.2, %v2356_v50  ;;  %vm2358_vm9 = vcmp.ge.f32.partialorder %v2356_v50, 0.0 }
 0x293   : > { %2190 = vrot.lane.b32.xlu0 %v2186_v27, %s3901_s10  ;;  %v742_v27 = vsel %vm738_vm14, %v736_v22, %v740_v13  ;;  %v2357_v22 = vadd.f32 %v4324_v48, %v4238_v29  ;;  %v2631_v13 = vadd.f32 %v4334_v21, %v4240_v36 }
 0x294   : > { %v2483_v63 = vpop.permute.xlu1 %2482  ;;  %v2362_v44 = vsel %vm2358_vm9, %v2356_v50, %v2360_v25  ;;  %v4353_v50 = vsel %vm590_vm3, %v612_v9, -1e+30  ;;  %v4360_v25 = vsel %vm590_vm3, %v742_v27, -1e+30  ;;  %v2770_v27 = vadd.f32 %v4223_v18, %v4242_v37 }
 0x295   : > { %v2489_v16 = vadd.f32 %v2483_v63, %v4250_v42  ;;  %v617_v8 = vsel %vm616_vm2, %v4353_v50, -inf  ;;  %v746_v63 = vsel %vm616_vm2, %v4360_v25, -inf  ;;  %vm2359_vm8 = vcmp.ge.f32.partialorder %v2357_v22, 0.0 }
 0x296   : > { %vm2772_vm11 = vcmp.ge.f32.partialorder %v2770_v27, 0.0 }
 0x297   : > { %2366 = vrot.lane.b32.xlu0 %v2362_v44, %s3909_s18  ;;  %vm2491_vm10 = vcmp.ge.f32.partialorder %v2489_v16, 0.0  ;;  %v2493_v46 = vmul.f32 0.2, %v2489_v16  ;;  %v1768_v44 = vadd.f32 %v4272_v26, %v4238_v29  ;;  %v2181_v26 = vadd.f32 %v4302_v20, %v4242_v37 }
 0x299   : > { %v2763_v12 = vpop.permute.xlu1 %2762  ;;  %v2495_v15 = vsel %vm2491_vm10, %v2489_v16, %v2493_v46  ;;  %v1178_v16 = vadd.f32 %v4225_v19, %v4238_v29  ;;  %v1901_v46 = vadd.f32 %v4294_v6, %v4250_v42  ;;  %vm1770_vm4 = vcmp.ge.f32.partialorder %v1768_v44, 0.0 }
 0x29a   : > { %v2769_v4 = vadd.f32 %v2763_v12, %v4242_v37  ;;  %v1772_v12 = vmul.f32 0.2, %v1768_v44  ;;  %v2185_v6 = vmul.f32 0.2, %v2181_v26  ;;  %vm2183_vm7 = vcmp.ge.f32.partialorder %v2181_v26, 0.0 }
 0x29b   : > { %2499 = vrot.lane.b32.xlu0 %v2495_v15, %s3909_s18  ;;  %v1182_v49 = vmul.f32 0.2, %v1178_v16  ;;  %vm1180_vm15 = vcmp.ge.f32.partialorder %v1178_v16, 0.0  ;;  %v2042_v15 = vadd.f32 %v4300_v1, %v4240_v36  ;;  %v1905_v7 = vmul.f32 0.2, %v1901_v46 }
 0x29c   : > { %v2773_v23 = vmul.f32 0.2, %v2769_v4  ;;  %vm2771_vm13 = vcmp.ge.f32.partialorder %v2769_v4, 0.0  ;;  %vm1903_vm5 = vcmp.ge.f32.partialorder %v1901_v46, 0.0  ;;  %v2361_v1 = vmul.f32 0.2, %v2357_v22 }
 0x29d   : > { %v1184_v10 = vsel %vm1180_vm15, %v1178_v16, %v1182_v49  ;;  %v2046_v19 = vmul.f32 0.2, %v2042_v15  ;;  %v1907_v24 = vsel %vm1903_vm5, %v1901_v46, %v1905_v7  ;;  %vm2044_vm6 = vcmp.ge.f32.partialorder %v2042_v15, 0.0 }
 0x29e   : > { %v2775_v45 = vsel %vm2771_vm13, %v2769_v4, %v2773_v23  ;;  %v1774_v4 = vsel %vm1770_vm4, %v1768_v44, %v1772_v12  ;;  %v2490_v23 = vadd.f32 %v4329_v47, %v4250_v42  ;;  %v2187_v9 = vsel %vm2183_vm7, %v2181_v26, %v2185_v6 }
 0x29f   : > { %2640 = vrot.lane.b32.xlu0 %v2636_v14, %s3909_s18  ;;  %v2048_v14 = vsel %vm2044_vm6, %v2042_v15, %v2046_v19  ;;  %v2635_v29 = vmul.f32 0.2, %v2631_v13  ;;  %vm2633_vm10 = vcmp.ge.f32.partialorder %v2631_v13, 0.0  ;;  %v2774_v47 = vmul.f32 0.2, %v2770_v27 }
 0x2a0   : > { %v2494_v20 = vmul.f32 0.2, %v2490_v23  ;;  %vm2492_vm9 = vcmp.ge.f32.partialorder %v2490_v23, 0.0 }
 0x2a1   : > { %v2637_v42 = vsel %vm2633_vm10, %v2631_v13, %v2635_v29  ;;  %v4436_v13 = vld [vmem:[%s4234_s16 + $0x10] sm:$0xff]  ;;  %v4439_v29 = vld [vmem:[%s4234_s16 + $0x28] sm:$0xff] }
 0x2a2   : > { %v2496_v48 = vsel %vm2492_vm9, %v2490_v23, %v2494_v20  ;;  %vm1166_vm13 = vcmp.gt.f32.partialorder %v4436_v13, 0.0  ;;  %vm1756_vm14 = vcmp.gt.f32.partialorder %v4439_v29, 0.0 }
 0x2a3   : > { %2779 = vrot.lane.b32.xlu0 %v2775_v45, %s3909_s18  ;;  %v2363_v45 = vsel %vm2359_vm8, %v2357_v22, %v2361_v1 }
 0x2a6   : > { %618 = vmax.xlane.f32.xlu1 %v617_v8  ;;  %v2776_v8 = vsel %vm2772_vm11, %v2770_v27, %v2774_v47 }
 0x2aa   : > { %747 = vmax.xlane.f32.xlu1 %v746_v63  ;;  %v4396_v63 = vld [vmem:[%s4234_s16 + $0x18] sm:$0xff] }
 0x2ab   : > { %vm1167_vm12 = vcmp.gt.f32.partialorder %v4396_v63, 0.0 }
 0x2bb   : > { %1188 = vrot.lane.b32.xlu1 %v1184_v10, %s3908_s17  ;;  %s261_s17 = sand.u32 1, %s3891_s22  }
 0x2bc   : > { %s5065_s28 = scalar_lea.sflag [#allocation3], %s261_s17 }
 0x2bf   : > { %1779 = vrot.lane.b32.xlu1 %v1774_v4, %s3901_s10 }
 0x2c3   : > { %1912 = vrot.lane.b32.xlu1 %v1907_v24, %s3901_s10 }
 0x2c7   : > { %2053 = vrot.lane.b32.xlu1 %v2048_v14, %s3901_s10 }
 0x2cb   : > { %2192 = vrot.lane.b32.xlu1 %v2187_v9, %s3901_s10 }
 0x2cf   : > { %2368 = vrot.lane.b32.xlu1 %v2363_v45, %s3909_s18 }
 0x2d3   : > { %2501 = vrot.lane.b32.xlu1 %v2496_v48, %s3909_s18 }
 0x2d7   : > { %2642 = vrot.lane.b32.xlu1 %v2637_v42, %s3909_s18 }
 0x2db   : > { %2781 = vrot.lane.b32.xlu1 %v2776_v8, %s3909_s18  ;;  %s3165_s18 = sshll.u32 %s261_s17, 4 }
 0x2e6   : > { %v4391_v36 = vpop.xlane.xlu1 %887  ;;  %v4425_v24 = vpop.xlane.xlu0 %1022 }
 0x2ea   : > { %v4393_v21 = vpop.xlane.xlu1 %621  ;;  %v4427_v6 = vpop.xlane.xlu0 %884 }
 0x2ee   : > { %v4398_v16 = vpop.xlane.xlu1 %750  ;;  %v4429_v22 = vpop.xlane.xlu0 %1019 }
 0x2f2   : > { %v1191_v18 = vpop.permute.xlu1 %1190  ;;  %v1322_v14 = vpop.permute.xlu0 %1321 }
 0x2f3   : > { %v4403_v37 = vsel %vm1167_vm12, %v1191_v18, -1e+30  ;;  %v4451_v47 = vsel %vm1166_vm13, %v1322_v14, -1e+30 }
 0x2f4   : > { %v1199_v44 = vsel %vm616_vm2, %v4403_v37, -inf }
 0x2f5   : > { %1200 = vmax.xlane.f32.xlu0 %v1199_v44 }
 0x2f6   : > { %v1324_v49 = vpop.permute.xlu1 %1323  ;;  %v1463_v1 = vpop.permute.xlu0 %1462 }
 0x2f7   : > { %v4409_v46 = vsel %vm1167_vm12, %v1324_v49, -1e+30 }
 0x2f8   : > { %v1332_v10 = vsel %vm616_vm2, %v4409_v46, -inf }
 0x2f9   : > { %1333 = vmax.xlane.f32.xlu0 %v1332_v10  ;;  %v1329_v10 = vsel %vm616_vm2, %v4451_v47, -inf }
 0x2fa   : > { %v1465_v12 = vpop.permute.xlu1 %1464  ;;  %v1602_v23 = vpop.permute.xlu0 %1601 }
 0x2fb   : > { %v4415_v15 = vsel %vm1167_vm12, %v1465_v12, -1e+30  ;;  %v4463_v12 = vsel %vm1166_vm13, %v1463_v1, -1e+30  ;;  %v4478_v1 = vsel %vm1166_vm13, %v1602_v23, -1e+30 }
 0x2fc   : > { %v1473_v7 = vsel %vm616_vm2, %v4415_v15, -inf  ;;  %v4494_v23 = vld [vmem:[%s4234_s16 + $0x38] sm:$0xff] }
 0x2fd   : > { %vm2345_vm4 = vcmp.gt.f32.partialorder %v4494_v23, 0.0 }
 0x2fe   : > { %v1604_v4 = vpop.permute.xlu1 %1603  ;;  %v1778_v45 = vpop.permute.xlu0 %1777 }
 0x2ff   : > { %v4421_v19 = vsel %vm1167_vm12, %v1604_v4, -1e+30  ;;  %1474 = vmax.xlane.f32.xlu1 %v1473_v7  ;;  %v4466_v7 = vld [vmem:[%s4234_s16 + $0x20] sm:$0xff] }
 0x300   : > { %v1612_v26 = vsel %vm616_vm2, %v4421_v19, -inf  ;;  %vm1755_vm15 = vcmp.gt.f32.partialorder %v4466_v7, 0.0 }
 0x302   : > { %v1911_v8 = vpop.permute.xlu0 %1910 }
 0x303   : > { %1613 = vmax.xlane.f32.xlu1 %v1612_v26 }
 0x306   : > { %v2052_v14 = vpop.permute.xlu0 %2051 }
 0x307   : > { %v4519_v33 = vsel %vm1755_vm15, %v2052_v14, -1e+30 }
 0x308   : > { %v2059_v32 = vsel %vm616_vm2, %v4519_v33, -inf }
 0x32f   : > { %v4431_v9 = vpop.xlane.xlu1 %618 }
 0x333   : > { %v4433_v20 = vpop.xlane.xlu1 %747 }
 0x337   : > { %v1189_v48 = vpop.permute.xlu1 %1188 }
 0x338   : > { %v4444_v27 = vsel %vm1166_vm13, %v1189_v48, -1e+30 }
 0x339   : > { %v1196_v42 = vsel %vm616_vm2, %v4444_v27, -inf }
 0x33a   : > { %1197 = vmax.xlane.f32.xlu0 %v1196_v42  ;;  %v1470_v42 = vsel %vm616_vm2, %v4463_v12, -inf }
 0x33b   : > { %v1780_v18 = vpop.permute.xlu1 %1779 }
 0x33c   : > { %v4455_v44 = vsel %vm1756_vm14, %v1780_v18, -1e+30 }
 0x33d   : > { %v1788_v49 = vsel %vm616_vm2, %v4455_v44, -inf }
 0x33e   : > { %1330 = vmax.xlane.f32.xlu0 %v1329_v10  ;;  %1789 = vmax.xlane.f32.xlu1 %v1788_v49 }
 0x33f   : > { %v1913_v4 = vpop.permute.xlu1 %1912 }
 0x340   : > { %v4470_v26 = vsel %vm1756_vm14, %v1913_v4, -1e+30  ;;  %v1609_v4 = vsel %vm616_vm2, %v4478_v1, -inf }
 0x341   : > { %v1921_v48 = vsel %vm616_vm2, %v4470_v26, -inf }
 0x342   : > { %1471 = vmax.xlane.f32.xlu0 %v1470_v42  ;;  %1922 = vmax.xlane.f32.xlu1 %v1921_v48  ;;  %v4491_v48 = vsel %vm1755_vm15, %v1778_v45, -1e+30  ;;  %v2191_v42 = vpop.permute.xlu0 %2190  ;;  %v4507_v45 = vsel %vm1755_vm15, %v1911_v8, -1e+30 }
 0x343   : > { %v2054_v18 = vpop.permute.xlu1 %2053  ;;  %v1785_v57 = vsel %vm616_vm2, %v4491_v48, -inf  ;;  %v1918_v2 = vsel %vm616_vm2, %v4507_v45, -inf  ;;  %v4534_v62 = vsel %vm1755_vm15, %v2191_v42, -1e+30 }
 0x344   : > { %v4483_v49 = vsel %vm1756_vm14, %v2054_v18, -1e+30  ;;  %v2198_v60 = vsel %vm616_vm2, %v4534_v62, -inf }
 0x345   : > { %v2062_v10 = vsel %vm616_vm2, %v4483_v49, -inf }
 0x346   : > { %1610 = vmax.xlane.f32.xlu0 %v1609_v4  ;;  %2063 = vmax.xlane.f32.xlu1 %v2062_v10  ;;  %v2367_v4 = vpop.permute.xlu0 %2366 }
 0x347   : > { %v2193_v61 = vpop.permute.xlu1 %2192 }
 0x348   : > { %v4498_v18 = vsel %vm1756_vm14, %v2193_v61, -1e+30 }
 0x349   : > { %v2201_v5 = vsel %vm616_vm2, %v4498_v18, -inf }
 0x34a   : > { %1786 = vmax.xlane.f32.xlu0 %v1785_v57  ;;  %2202 = vmax.xlane.f32.xlu1 %v2201_v5  ;;  %v4522_v5 = vld [vmem:[%s4234_s16 + $0x30] sm:$0xff] }
 0x34b   : > { %v2369_v10 = vpop.permute.xlu1 %2368  ;;  %vm2344_vm5 = vcmp.gt.f32.partialorder %v4522_v5, 0.0 }
 0x34c   : > { %v4511_v61 = vsel %vm2345_vm4, %v2369_v10, -1e+30  ;;  %v4547_v42 = vsel %vm2344_vm5, %v2367_v4, -1e+30 }
 0x34d   : > { %v2377_v59 = vsel %vm616_vm2, %v4511_v61, -inf  ;;  %v2374_v0 = vsel %vm616_vm2, %v4547_v42, -inf }
 0x34e   : > { %1919 = vmax.xlane.f32.xlu0 %v1918_v2  ;;  %2378 = vmax.xlane.f32.xlu1 %v2377_v59  ;;  %v2500_v59 = vpop.permute.xlu0 %2499 }
 0x34f   : > { %v2502_v57 = vpop.permute.xlu1 %2501  ;;  %v4559_v56 = vsel %vm2344_vm5, %v2500_v59, -1e+30  ;;  %v1025_v59 = vsub.f32 %v4262_v17, %v4425_v24  ;;  %v1024_v17 = vsub.f32 %v4288_v51, %v4429_v22 }
 0x350   : > { %v4526_v8 = vsel %vm2345_vm4, %v2502_v57, -1e+30 }
 0x351   : > { %v2510_v10 = vsel %vm616_vm2, %v4526_v8, -inf }
 0x352   : > { %2060 = vmax.xlane.f32.xlu0 %v2059_v32  ;;  %2511 = vmax.xlane.f32.xlu1 %v2510_v10  ;;  %v2641_v55 = vpop.permute.xlu0 %2640 }
 0x353   : > { %v2643_v2 = vpop.permute.xlu1 %2642  ;;  %v4565_v4 = vsel %vm2344_vm5, %v2641_v55, -1e+30  ;;  %v890_v55 = vsub.f32 %v4266_v11, %v4391_v36  ;;  %v753_v11 = vsub.f32 %v4292_v3, %v4398_v16 }
 0x354   : > { %v4539_v14 = vsel %vm2345_vm4, %v2643_v2, -1e+30 }
 0x355   : > { %v2651_v57 = vsel %vm616_vm2, %v4539_v14, -inf  ;;  %v756_v24 = vmul.f32 1.442695, %v753_v11 }
 0x356   : > { %2199 = vmax.xlane.f32.xlu0 %v2198_v60  ;;  %2652 = vmax.xlane.f32.xlu1 %v2651_v57  ;;  %v2507_v60 = vsel %vm616_vm2, %v4559_v56, -inf  ;;  %v2780_v57 = vpop.permute.xlu0 %2779 }
 0x357   : > { %v2782_v32 = vpop.permute.xlu1 %2781  ;;  %v4571_v54 = vsel %vm2344_vm5, %v2780_v57, -1e+30  ;;  %v624_v57 = vsub.f32 %v4280_v43, %v4393_v21  ;;  %v623_v43 = vsub.f32 %v4353_v50, %v4431_v9  ;;  %v1026_v21 = vmul.f32 1.442695, %v1024_v17 }
 0x358   : > { %v4551_v10 = vsel %vm2345_vm4, %v2782_v32, -1e+30  ;;  %v2648_v32 = vsel %vm616_vm2, %v4565_v4, -inf }
 0x359   : > { %v2790_v2 = vsel %vm616_vm2, %v4551_v10, -inf }
 0x35a   : > { %2375 = vmax.xlane.f32.xlu0 %v2374_v0  ;;  %2791 = vmax.xlane.f32.xlu1 %v2790_v2  ;;  %v2787_v0 = vsel %vm616_vm2, %v4571_v54, -inf  ;;  %v893_v2 = vmul.f32 1.442695, %v890_v55 }
 0x35c   : > { %3711 = vpow2.f32 %v893_v2 }
 0x35e   : > { %2508 = vmax.xlane.f32.xlu0 %v2507_v60  ;;  %v1028_v60 = vmul.f32 1.442695, %v1025_v59 }
 0x360   : > { %3713 = vpow2.f32 %v1028_v60 }
 0x362   : > { %2649 = vmax.xlane.f32.xlu0 %v2648_v32  ;;  %v889_v32 = vsub.f32 %v4276_v28, %v4427_v6  ;;  %v752_v28 = vsub.f32 %v4360_v25, %v4433_v20  ;;  %v625_v6 = vmul.f32 1.442695, %v623_v43 }
 0x364   : > { %v891_v58 = vmul.f32 1.442695, %v889_v32  ;;  %v754_v2 = vmul.f32 1.442695, %v752_v28 }
 0x366   : > { %2788 = vmax.xlane.f32.xlu0 %v2787_v0  ;;  %v627_v0 = vmul.f32 1.442695, %v624_v57 }
 0x368   : > { %3715 = vpow2.f32 %v627_v0 }
 0x369   : > { %3717 = vpow2.f32 %v891_v58  ;;  %v3712_v16 = vpop.eup %3711 }
 0x36a   : > { %3719 = vpow2.f32 %v756_v24  ;;  %v4600_v58 = vsel %vm591_vm1, %v3712_v16, 0.0 }
 0x36b   : > { %2815 = vrot.lane.b32.xlu1 %v4098_v34, %s3903_s11  ;;  %3721 = vpow2.f32 %v1026_v21 }
 0x36c   : > { %3723 = vpow2.f32 %v625_v6 }
 0x36d   : > { %v3714_v25 = vpop.eup %3713  ;;  %3725 = vpow2.f32 %v754_v2 }
 0x37c   : > { %2676 = vrot.lane.b32.xlu0 %v4098_v34, %s3902_s26 }
 0x37e   : > { %v1201_v36 = vpop.xlane.xlu0 %1200 }
 0x37f   : > { %v1203_v55 = vsub.f32 %v4403_v37, %v1201_v36  ;;  %v900_v37 = vsel %vm616_vm2, %v4600_v58, 0.0 }
 0x381   : > { %v1206_v22 = vmul.f32 1.442695, %v1203_v55 }
 0x382   : > { %v1334_v3 = vpop.xlane.xlu0 %1333 }
 0x383   : > { %v1336_v51 = vsub.f32 %v4409_v46, %v1334_v3  ;;  %3727 = vpow2.f32 %v1206_v22  ;;  %v4607_v46 = vsel %vm591_vm1, %v3714_v25, 0.0 }
 0x384   : > { %v1035_v32 = vsel %vm616_vm2, %v4607_v46, 0.0 }
 0x385   : > { %v1339_v20 = vmul.f32 1.442695, %v1336_v51 }
 0x387   : > { %3729 = vpow2.f32 %v1339_v20 }
 0x388   : > { %v1475_v59 = vpop.xlane.xlu1 %1474 }
 0x389   : > { %v1477_v50 = vsub.f32 %v4415_v15, %v1475_v59  ;;  %v3716_v15 = vpop.eup %3715 }
 0x38a   : > { %v3718_v0 = vpop.eup %3717  ;;  %v4613_v36 = vsel %vm591_vm1, %v3716_v15, 0.0 }
 0x38b   : > { %v1480_v60 = vmul.f32 1.442695, %v1477_v50  ;;  %v3720_v17 = vpop.eup %3719  ;;  %v4619_v43 = vsel %vm590_vm3, %v3718_v0, 0.0 }
 0x38c   : > { %v1614_v9 = vpop.xlane.xlu1 %1613  ;;  %v3722_v24 = vpop.eup %3721  ;;  %v4623_v21 = vsel %vm591_vm1, %v3720_v17, 0.0  ;;  %v897_v6 = vsel %vm616_vm2, %v4619_v43, 0.0  ;;  %vm1157_vm1 = vcmask 523264  }
 0x38d   : > { %v1616_v57 = vsub.f32 %v4421_v19, %v1614_v9  ;;  %3731 = vpow2.f32 %v1480_v60  ;;  %v634_v19 = vsel %vm616_vm2, %v4613_v36, 0.0  ;;  %v3724_v28 = vpop.eup %3723  ;;  %v763_v55 = vsel %vm616_vm2, %v4623_v21, 0.0 }
 0x38e   : > { %v3726_v3 = vpop.eup %3725  ;;  %v4631_v16 = vsel %vm590_vm3, %v3722_v24, 0.0  ;;  %v4635_v59 = vsel %vm590_vm3, %v3724_v28, 0.0 }
 0x38f   : > { %901 = vadd.xlane.f32.xlu1 %v900_v37  ;;  %v1619_v11 = vmul.f32 1.442695, %v1616_v57  ;;  %v1032_v2 = vsel %vm616_vm2, %v4631_v16, 0.0  ;;  %v631_v51 = vsel %vm616_vm2, %v4635_v59, 0.0  ;;  %v4647_v25 = vsel %vm590_vm3, %v3726_v3, 0.0 }
 0x390   : > { %v3728_v39 = vpop.eup %3727  ;;  %v760_v37 = vsel %vm616_vm2, %v4647_v25, 0.0 }
 0x391   : > { %3733 = vpow2.f32 %v1619_v11  ;;  %v4643_v50 = vsel %vm1167_vm12, %v3728_v39, 0.0 }
 0x392   : > { %v1213_v20 = vsel %vm616_vm2, %v4643_v50, 0.0 }
 0x393   : > { %1036 = vadd.xlane.f32.xlu1 %v1035_v32 }
 0x394   : > { %v3730_v22 = vpop.eup %3729 }
 0x395   : > { %v4655_v60 = vsel %vm1167_vm12, %v3730_v22, 0.0 }
 0x396   : > { %v1346_v15 = vsel %vm616_vm2, %v4655_v60, 0.0 }
 0x397   : > { %635 = vadd.xlane.f32.xlu1 %v634_v19 }
 0x39a   : > { %v3732_v9 = vpop.eup %3731 }
 0x39b   : > { %898 = vadd.xlane.f32.xlu0 %v897_v6  ;;  %764 = vadd.xlane.f32.xlu1 %v763_v55  ;;  %v4659_v57 = vsel %vm1167_vm12, %v3732_v9, 0.0 }
 0x39c   : > { %v1487_v32 = vsel %vm616_vm2, %v4659_v57, 0.0 }
 0x39e   : > { %v3734_v40 = vpop.eup %3733 }
 0x39f   : > { %1033 = vadd.xlane.f32.xlu0 %v1032_v2  ;;  %632 = vadd.xlane.f32.xlu1 %v631_v51  ;;  %v4667_v0 = vsel %vm1167_vm12, %v3734_v40, 0.0 }
 0x3a0   : > { %v1626_v11 = vsel %vm616_vm2, %v4667_v0, 0.0 }
 0x3a3   : > { %1214 = vadd.xlane.f32.xlu0 %v1213_v20  ;;  %761 = vadd.xlane.f32.xlu1 %v760_v37 }
 0x3a7   : > { %1347 = vadd.xlane.f32.xlu0 %v1346_v15  ;;  %1488 = vadd.xlane.f32.xlu1 %v1487_v32 }
 0x3ab   : > { %1627 = vadd.xlane.f32.xlu1 %v1626_v11 }
 0x3c3   : > { %v1198_v17 = vpop.xlane.xlu0 %1197 }
 0x3c4   : > { %v1202_v19 = vsub.f32 %v4444_v27, %v1198_v17 }
 0x3c6   : > { %v1204_v24 = vmul.f32 1.442695, %v1202_v19 }
 0x3c7   : > { %v1331_v28 = vpop.xlane.xlu0 %1330  ;;  %v1790_v6 = vpop.xlane.xlu1 %1789 }
 0x3c8   : > { %3735 = vpow2.f32 %v1204_v24  ;;  %v1335_v55 = vsub.f32 %v4451_v47, %v1331_v28  ;;  %v1792_v3 = vsub.f32 %v4455_v44, %v1790_v6 }
 0x3ca   : > { %v1337_v39 = vmul.f32 1.442695, %v1335_v55  ;;  %v1795_v2 = vmul.f32 1.442695, %v1792_v3 }
 0x3cb   : > { %v1472_v63 = vpop.xlane.xlu0 %1471  ;;  %v1923_v51 = vpop.xlane.xlu1 %1922 }
 0x3cc   : > { %3737 = vpow2.f32 %v1337_v39  ;;  %v1476_v22 = vsub.f32 %v4463_v12, %v1472_v63  ;;  %v1925_v9 = vsub.f32 %v4470_v26, %v1923_v51 }
 0x3cd   : > { %3739 = vpow2.f32 %v1795_v2 }
 0x3ce   : > { %v1478_v20 = vmul.f32 1.442695, %v1476_v22  ;;  %v1928_v27 = vmul.f32 1.442695, %v1925_v9 }
 0x3cf   : > { %v1611_v37 = vpop.xlane.xlu0 %1610  ;;  %v2064_v40 = vpop.xlane.xlu1 %2063 }
 0x3d0   : > { %3741 = vpow2.f32 %v1478_v20  ;;  %v1615_v15 = vsub.f32 %v4478_v1, %v1611_v37  ;;  %v2066_v47 = vsub.f32 %v4483_v49, %v2064_v40 }
 0x3d1   : > { %3743 = vpow2.f32 %v1928_v27 }
 0x3d2   : > { %v1617_v44 = vmul.f32 1.442695, %v1615_v15  ;;  %v2069_v32 = vmul.f32 1.442695, %v2066_v47 }
 0x3d3   : > { %v1787_v11 = vpop.xlane.xlu0 %1786  ;;  %v2203_v17 = vpop.xlane.xlu1 %2202 }
 0x3d4   : > { %3745 = vpow2.f32 %v1617_v44  ;;  %v1791_v12 = vsub.f32 %v4491_v48, %v1787_v11  ;;  %v2205_v26 = vsub.f32 %v4498_v18, %v2203_v17 }
 0x3d5   : > { %v3736_v19 = vpop.eup %3735  ;;  %3747 = vpow2.f32 %v2069_v32 }
 0x3d6   : > { %v1793_v24 = vmul.f32 1.442695, %v1791_v12  ;;  %v2208_v28 = vmul.f32 1.442695, %v2205_v26  ;;  %v4682_v6 = vsel %vm1166_vm13, %v3736_v19, 0.0 }
 0x3d7   : > { %v1920_v1 = vpop.xlane.xlu0 %1919  ;;  %v2379_v49 = vpop.xlane.xlu1 %2378  ;;  %v1210_v55 = vsel %vm616_vm2, %v4682_v6, 0.0 }
 0x3d8   : > { %3749 = vpow2.f32 %v1793_v24  ;;  %v1924_v3 = vsub.f32 %v4507_v45, %v1920_v1  ;;  %v2381_v48 = vsub.f32 %v4511_v61, %v2379_v49  ;;  %1211 = vadd.xlane.f32.xlu0 %v1210_v55 }
 0x3d9   : > { %v3738_v18 = vpop.eup %3737  ;;  %3751 = vpow2.f32 %v2208_v28 }
 0x3da   : > { %v3740_v39 = vpop.eup %3739  ;;  %v1926_v2 = vmul.f32 1.442695, %v1924_v3  ;;  %v2384_v63 = vmul.f32 1.442695, %v2381_v48  ;;  %v4690_v51 = vsel %vm1166_vm13, %v3738_v18, 0.0 }
 0x3db   : > { %v2061_v22 = vpop.xlane.xlu0 %2060  ;;  %v2512_v9 = vpop.xlane.xlu1 %2511  ;;  %v1343_v20 = vsel %vm616_vm2, %v4690_v51, 0.0  ;;  %v4696_v45 = vsel %vm1756_vm14, %v3740_v39, 0.0 }
 0x3dc   : > { %3753 = vpow2.f32 %v1926_v2  ;;  %v2065_v61 = vsub.f32 %v4519_v33, %v2061_v22  ;;  %v2514_v27 = vsub.f32 %v4526_v8, %v2512_v9  ;;  %1344 = vadd.xlane.f32.xlu0 %v1343_v20  ;;  %v1802_v37 = vsel %vm616_vm2, %v4696_v45, 0.0 }
 0x3dd   : > { %v3742_v40 = vpop.eup %3741  ;;  %3755 = vpow2.f32 %v2384_v63  ;;  %1803 = vadd.xlane.f32.xlu1 %v1802_v37 }
 0x3de   : > { %v3744_v15 = vpop.eup %3743  ;;  %v2067_v47 = vmul.f32 1.442695, %v2065_v61  ;;  %v4704_v44 = vsel %vm1166_vm13, %v3742_v40, 0.0  ;;  %v2517_v32 = vmul.f32 1.442695, %v2514_v27 }
 0x3df   : > { %v2200_v11 = vpop.xlane.xlu0 %2199  ;;  %v2653_v17 = vpop.xlane.xlu1 %2652  ;;  %v1484_v33 = vsel %vm616_vm2, %v4704_v44, 0.0  ;;  %v4710_v8 = vsel %vm1756_vm14, %v3744_v15, 0.0 }
 0x3e0   : > { %3757 = vpow2.f32 %v2067_v47  ;;  %v2204_v12 = vsub.f32 %v4534_v62, %v2200_v11  ;;  %v2655_v26 = vsub.f32 %v4539_v14, %v2653_v17  ;;  %1485 = vadd.xlane.f32.xlu0 %v1484_v33  ;;  %v1935_v19 = vsel %vm616_vm2, %v4710_v8, 0.0 }
 0x3e1   : > { %v3746_v24 = vpop.eup %3745  ;;  %1936 = vadd.xlane.f32.xlu1 %v1935_v19  ;;  %3759 = vpow2.f32 %v2517_v32 }
 0x3e2   : > { %v3748_v28 = vpop.eup %3747  ;;  %v2206_v1 = vmul.f32 1.442695, %v2204_v12  ;;  %v2658_v49 = vmul.f32 1.442695, %v2655_v26  ;;  %v4718_v55 = vsel %vm1166_vm13, %v3746_v24, 0.0 }
 0x3e3   : > { %v2376_v3 = vpop.xlane.xlu0 %2375  ;;  %v2792_v48 = vpop.xlane.xlu1 %2791  ;;  %v1623_v62 = vsel %vm616_vm2, %v4718_v55, 0.0  ;;  %v4724_v14 = vsel %vm1756_vm14, %v3748_v28, 0.0 }
 0x3e4   : > { %3761 = vpow2.f32 %v2206_v1  ;;  %v2380_v18 = vsub.f32 %v4547_v42, %v2376_v3  ;;  %v2794_v39 = vsub.f32 %v4551_v10, %v2792_v48  ;;  %1624 = vadd.xlane.f32.xlu0 %v1623_v62  ;;  %v2076_v13 = vsel %vm616_vm2, %v4724_v14, 0.0 }
 0x3e5   : > { %v3750_v2 = vpop.eup %3749  ;;  %3763 = vpow2.f32 %v2658_v49  ;;  %2077 = vadd.xlane.f32.xlu1 %v2076_v13 }
 0x3e6   : > { %v3752_v63 = vpop.eup %3751  ;;  %v2382_v22 = vmul.f32 1.442695, %v2380_v18  ;;  %v2797_v9 = vmul.f32 1.442695, %v2794_v39  ;;  %v4732_v20 = vsel %vm1755_vm15, %v3750_v2, 0.0 }
 0x3e7   : > { %v2509_v61 = vpop.xlane.xlu0 %2508  ;;  %v1799_v42 = vsel %vm616_vm2, %v4732_v20, 0.0  ;;  %v4738_v10 = vsel %vm1756_vm14, %v3752_v63, 0.0 }
 0x3e8   : > { %3765 = vpow2.f32 %v2382_v22  ;;  %v2513_v27 = vsub.f32 %v4559_v56, %v2509_v61  ;;  %1800 = vadd.xlane.f32.xlu0 %v1799_v42  ;;  %v2215_v37 = vsel %vm616_vm2, %v4738_v10, 0.0 }
 0x3e9   : > { %v3754_v40 = vpop.eup %3753  ;;  %3767 = vpow2.f32 %v2797_v9  ;;  %2216 = vadd.xlane.f32.xlu1 %v2215_v37 }
 0x3ea   : > { %v3756_v15 = vpop.eup %3755  ;;  %v2515_v47 = vmul.f32 1.442695, %v2513_v27  ;;  %v4745_v32 = vsel %vm1755_vm15, %v3754_v40, 0.0 }
 0x3eb   : > { %v2650_v11 = vpop.xlane.xlu0 %2649  ;;  %v1932_v29 = vsel %vm616_vm2, %v4745_v32, 0.0  ;;  %v4751_v56 = vsel %vm2345_vm4, %v3756_v15, 0.0 }
 0x3ec   : > { %3769 = vpow2.f32 %v2515_v47  ;;  %v2654_v17 = vsub.f32 %v4565_v4, %v2650_v11  ;;  %1933 = vadd.xlane.f32.xlu0 %v1932_v29  ;;  %v2391_v33 = vsel %vm616_vm2, %v4751_v56, 0.0 }
 0x3ed   : > { %v3758_v12 = vpop.eup %3757  ;;  %2392 = vadd.xlane.f32.xlu1 %v2391_v33  ;;  %v4813_v33 = vpop.permute.xlu1 %2815 }
 0x3ee   : > { %v2656_v26 = vmul.f32 1.442695, %v2654_v17  ;;  %v4758_v19 = vsel %vm1755_vm15, %v3758_v12, 0.0  ;;  %v3760_v1 = vpop.eup %3759 }
 0x3ef   : > { %v2789_v24 = vpop.xlane.xlu0 %2788  ;;  %v2073_v28 = vsel %vm616_vm2, %v4758_v19, 0.0  ;;  %v4777_v13 = vsel %vm2345_vm4, %v3760_v1, 0.0 }
 0x3f0   : > { %3771 = vpow2.f32 %v2656_v26  ;;  %v2793_v49 = vsub.f32 %v4571_v54, %v2789_v24  ;;  %2074 = vadd.xlane.f32.xlu0 %v2073_v28  ;;  %v2524_v22 = vsel %vm616_vm2, %v4777_v13, 0.0 }
 0x3f1   : > { %v3762_v4 = vpop.eup %3761 }
 0x3f2   : > { %v3764_v3 = vpop.eup %3763  ;;  %v2795_v48 = vmul.f32 1.442695, %v2793_v49  ;;  %v4765_v62 = vsel %vm1755_vm15, %v3762_v4, 0.0 }
 0x3f3   : > { %v2212_v18 = vsel %vm616_vm2, %v4765_v62, 0.0  ;;  %v4771_v39 = vsel %vm2345_vm4, %v3764_v3, 0.0  ;;  %v4817_v24 = vpop.permute.xlu0 %2676 }
 0x3f4   : > { %3773 = vpow2.f32 %v2795_v48  ;;  %2213 = vadd.xlane.f32.xlu0 %v2212_v18  ;;  %v2665_v54 = vsel %vm616_vm2, %v4771_v39, 0.0 }
 0x3f5   : > { %v3766_v2 = vpop.eup %3765  ;;  %2666 = vadd.xlane.f32.xlu1 %v2665_v54 }
 0x3f6   : > { %v3768_v7 = vpop.eup %3767  ;;  %v4781_v63 = vsel %vm2344_vm5, %v3766_v2, 0.0 }
 0x3f7   : > { %v2388_v9 = vsel %vm616_vm2, %v4781_v63, 0.0  ;;  %v4789_v61 = vsel %vm2345_vm4, %v3768_v7, 0.0 }
 0x3f8   : > { %2525 = vadd.xlane.f32.xlu0 %v2524_v22  ;;  %v2804_v27 = vsel %vm616_vm2, %v4789_v61, 0.0 }
 0x3f9   : > { %v3770_v42 = vpop.eup %3769  ;;  %2389 = vadd.xlane.f32.xlu1 %v2388_v9 }
 0x3fa   : > { %v4795_v37 = vsel %vm2344_vm5, %v3770_v42, 0.0 }
 0x3fb   : > { %v2521_v47 = vsel %vm616_vm2, %v4795_v37, 0.0 }
 0x3fc   : > { %2805 = vadd.xlane.f32.xlu0 %v2804_v27 }
 0x3fd   : > { %v3772_v40 = vpop.eup %3771 }
 0x3fe   : > { %v4799_v15 = vsel %vm2344_vm5, %v3772_v40, 0.0 }
 0x3ff   : > { %v2662_v23 = vsel %vm616_vm2, %v4799_v15, 0.0 }
 0x400   : > { %2663 = vadd.xlane.f32.xlu1 %v2662_v23  ;;  %2522 = vadd.xlane.f32.xlu0 %v2521_v47 }
 0x401   : > { %v3774_v11 = vpop.eup %3773 }
 0x402   : > { %v4807_v29 = vsel %vm2344_vm5, %v3774_v11, 0.0 }
 0x403   : > { %v2801_v17 = vsel %vm616_vm2, %v4807_v29, 0.0 }
 0x404   : > { %2802 = vadd.xlane.f32.xlu0 %v2801_v17 }
 0x411   : > { %2813 = vrot.lane.b32.xlu1 %v4103_v35, %s3903_s11 }
 0x418   : > { %v902_v12 = vpop.xlane.xlu1 %901 }
 0x419   : > { %v904_v5 = vmax.f32 %v902_v12, 1e-30 }
 0x41a   : > { %2674 = vrot.lane.b32.xlu0 %v4103_v35, %s3902_s26 }
 0x41b   : > { %3775 = vrcp.f32 %v904_v5 }
 0x41c   : > { %v1037_v26 = vpop.xlane.xlu1 %1036 }
 0x41d   : > { %v1039_v4 = vmax.f32 %v1037_v26, 1e-30 }
 0x420   : > { %v636_v28 = vpop.xlane.xlu1 %635 }
 0x421   : > { %v638_v48 = vmax.f32 %v636_v28, 1e-30 }
 0x424   : > { %v899_v1 = vpop.xlane.xlu0 %898  ;;  %v765_v49 = vpop.xlane.xlu1 %764 }
 0x425   : > { %v903_v3 = vmax.f32 %v899_v1, 1e-30  ;;  %v767_v22 = vmax.f32 %v765_v49, 1e-30 }
 0x427   : > { %3777 = vrcp.f32 %v903_v3 }
 0x428   : > { %v1034_v18 = vpop.xlane.xlu0 %1033  ;;  %v633_v54 = vpop.xlane.xlu1 %632  ;;  %3779 = vrcp.f32 %v1039_v4 }
 0x429   : > { %v1038_v2 = vmax.f32 %v1034_v18, 1e-30  ;;  %v637_v7 = vmax.f32 %v633_v54, 1e-30  ;;  %3781 = vrcp.f32 %v638_v48  ;;  %v3776_v27 = vpop.eup %3775 }
 0x42a   : > { %v908_v11 = vmul.f32 %v3776_v27, %v4600_v58 }
 0x42b   : > { %3783 = vrcp.f32 %v1038_v2 }
 0x42c   : > { %3785 = vrcp.f32 %v637_v7  ;;  %v762_v9 = vpop.xlane.xlu1 %761 }
 0x42d   : > { %v766_v42 = vmax.f32 %v762_v9, 1e-30  ;;  %3787 = vrcp.f32 %v767_v22 }
 0x42f   : > { %3789 = vrcp.f32 %v766_v42 }
 0x434   : > { %v3778_v40 = vpop.eup %3777 }
 0x435   : > { %v906_v23 = vmul.f32 %v3778_v40, %v4619_v43  ;;  %v3780_v47 = vpop.eup %3779 }
 0x436   : > { %v3782_v17 = vpop.eup %3781  ;;  %v1043_v58 = vmul.f32 %v3780_v47, %v4607_v46 }
 0x437   : > { %3429 = vmatprep.mubr.msk.f32.mxu0 %vm616_vm2, %v906_v23  ;;  %v642_v43 = vmul.f32 %v3782_v17, %v4613_v36  ;;  %v5148_v36 = vld [vmem:[#allocation11_spill] sm:$0xff] }
 0x438   : > { %v3784_v12 = vpop.eup %3783  ;;  %3430 = vmatmul.mubr.msk.f32.vlgmr.msra.gmra.mxu0 %vm616_vm2, %v908_v11 }
 0x439   : > { %v3786_v26 = vpop.eup %3785  ;;  %3433 = vmatpush3.msra.mxu0 %v4136_v41  ;;  %v1041_v28 = vmul.f32 %v3784_v12, %v4631_v16  ;;  %v5149_v16 = vld [vmem:[#allocation7_spill] sm:$0xff] }
 0x43a   : > { %3434 = vmatprep.subr.mxu0 %v4160_v52  ;;  %v640_v5 = vmul.f32 %v3786_v26, %v4635_v59  ;;  %v3788_v1 = vpop.eup %3787 }
 0x43b   : > { %3435 = vmatpush3.msra.mxu0 %v4160_v52  ;;  %3436 = vmatprep.mubr.msk.f32.mxu0 %vm616_vm2, %v1041_v28  ;;  %v771_v46 = vmul.f32 %v3788_v1, %v4623_v21 }
 0x43c   : > { %3415 = vmatprep.mubr.msk.f32.mxu1 %vm616_vm2, %v640_v5  ;;  %3439 = vmatprep.subr.mxu0 %v4081_v30  ;;  %v3790_v41 = vpop.eup %3789 }
 0x43d   : > { %3416 = vmatmul.mubr.msk.f32.vlgmr.msra.gmra.mxu1 %vm616_vm2, %v642_v43  ;;  %3437 = vmatmul.mubr.msk.f32.vlgmr.msra.gmra.mxu0 %vm616_vm2, %v1043_v58  ;;  %v769_v52 = vmul.f32 %v3790_v41, %v4647_v25 }
 0x43e   : > { %3419 = vmatpush3.msra.mxu1 %v4133_v38  ;;  %3440 = vmatpush3.msra.mxu0 %v4081_v30  ;;  %v5150_v30 = vld [vmem:[#allocation9_spill] sm:$0xff] }
 0x43f   : > { %3420 = vmatprep.subr.mxu1 %v4163_v53  ;;  %3441 = vmatprep.subr.mxu0 %v4085_v31  ;;  %v5151_v38 = vld [vmem:[#allocation17_spill] sm:$0xff] }
 0x440   : > { %3421 = vmatpush3.msra.mxu1 %v4163_v53  ;;  %3442 = vmatpush3.msra.mxu0 %v4085_v31  ;;  %v1215_v53 = vpop.xlane.xlu0 %1214  ;;  %v1489_v31 = vpop.xlane.xlu1 %1488 }
 0x441   : > { %3422 = vmatprep.mubr.msk.f32.mxu1 %vm616_vm2, %v769_v52  ;;  %3446 = vmatprep.subr.mxu0 %v5148_v36  ;;  %v1217_v21 = vmax.f32 %v1215_v53, 1e-30  ;;  %v1491_v2 = vmax.f32 %v1489_v31, 1e-30 }
 0x442   : > { %3460 = vmatprep.subr.mxu1 %v5149_v16  ;;  %3423 = vmatmul.mubr.msk.f32.vlgmr.msra.gmra.mxu1 %vm616_vm2, %v771_v46 }
 0x443   : > { %3461 = vmatpush3.msra.mxu1 %v5149_v16  ;;  %3791 = vrcp.f32 %v1217_v21 }
 0x444   : > { %3462 = vmatprep.subr.mxu1 %v5150_v30  ;;  %v1348_v59 = vpop.xlane.xlu0 %1347  ;;  %v1628_v49 = vpop.xlane.xlu1 %1627 }
 0x445   : > { %3463 = vmatpush3.msra.mxu1 %v5150_v30  ;;  %v1350_v3 = vmax.f32 %v1348_v59, 1e-30  ;;  %v1630_v42 = vmax.f32 %v1628_v49, 1e-30  ;;  %v5152_v30 = vld [vmem:[#allocation8_spill] sm:$0xff]  ;;  %v5153_v59 = vld [vmem:[#allocation13_spill] sm:$0xff] }
 0x446   : > { %3474 = vmatprep.subr.mxu1 %v5151_v38  ;;  %v5154_v49 = vld [vmem:[#allocation15_spill] sm:$0xff] }
 0x450   : > { %v3792_v11 = vpop.eup %3791 }
 0x451   : > { %v1221_v43 = vmul.f32 %v3792_v11, %v4643_v50 }
 0x461   : > { %v1212_v25 = vpop.xlane.xlu0 %1211 }
 0x462   : > { %v1216_v4 = vmax.f32 %v1212_v25, 1e-30 }
 0x464   : > { %3793 = vrcp.f32 %v1216_v4 }
 0x465   : > { %v1345_v48 = vpop.xlane.xlu0 %1344  ;;  %3795 = vrcp.f32 %v1350_v3 }
 0x466   : > { %v1349_v18 = vmax.f32 %v1345_v48, 1e-30  ;;  %v1804_v54 = vpop.xlane.xlu1 %1803 }
 0x467   : > { %v1806_v47 = vmax.f32 %v1804_v54, 1e-30 }
 0x468   : > { %3797 = vrcp.f32 %v1349_v18  ;;  %v5155_v18 = vld [vmem:[#allocation5_spill] sm:$0xff] }
 0x469   : > { %v1486_v7 = vpop.xlane.xlu0 %1485  ;;  %3799 = vrcp.f32 %v1491_v2 }
 0x46a   : > { %v1490_v22 = vmax.f32 %v1486_v7, 1e-30  ;;  %v1937_v9 = vpop.xlane.xlu1 %1936 }
 0x46b   : > { %v1939_v5 = vmax.f32 %v1937_v9, 1e-30 }
 0x46c   : > { %3801 = vrcp.f32 %v1490_v22 }
 0x46d   : > { %v1625_v27 = vpop.xlane.xlu0 %1624  ;;  %3803 = vrcp.f32 %v1630_v42 }
 0x46e   : > { %v1629_v40 = vmax.f32 %v1625_v27, 1e-30  ;;  %v2078_v23 = vpop.xlane.xlu1 %2077 }
 0x470   : > { %3805 = vrcp.f32 %v1629_v40  ;;  %v5157_v40 = vld [vmem:[#allocation18_spill] sm:$0xff] }
 0x471   : > { %v3794_v17 = vpop.eup %3793  ;;  %v1801_v12 = vpop.xlane.xlu0 %1800  ;;  %3807 = vrcp.f32 %v1806_v47 }
 0x472   : > { %v1805_v26 = vmax.f32 %v1801_v12, 1e-30  ;;  %v1219_v28 = vmul.f32 %v3794_v17, %v4682_v6  ;;  %v3796_v58 = vpop.eup %3795  ;;  %v2217_v1 = vpop.xlane.xlu1 %2216  ;;  %v2080_v6 = vmax.f32 %v2078_v23, 1e-30 }
 0x473   : > { %v1354_v50 = vmul.f32 %v3796_v58, %v4655_v60  ;;  %v2219_v60 = vmax.f32 %v2217_v1, 1e-30 }
 0x474   : > { %3809 = vrcp.f32 %v1805_v26  ;;  %3443 = vmatprep.mubr.msk.f32.mxu0 %vm616_vm2, %v1219_v28  ;;  %v5159_v28 = vld [vmem:[#allocation10_spill] sm:$0xff] }
 0x475   : > { %v3798_v41 = vpop.eup %3797  ;;  %v1934_v52 = vpop.xlane.xlu0 %1933  ;;  %3444 = vmatmul.mubr.msk.f32.vlgmr.msra.gmra.mxu0 %vm616_vm2, %v1221_v43  ;;  %3811 = vrcp.f32 %v1939_v5 }
 0x476   : > { %v1938_v46 = vmax.f32 %v1934_v52, 1e-30  ;;  %3447 = vmatpush3.msra.mxu0 %v5148_v36  ;;  %v1352_v16 = vmul.f32 %v3798_v41, %v4690_v51  ;;  %v3800_v53 = vpop.eup %3799  ;;  %v2393_v36 = vpop.xlane.xlu1 %2392 }
 0x477   : > { %3448 = vmatprep.subr.mxu0 %v5152_v30  ;;  %v1495_v4 = vmul.f32 %v3800_v53, %v4659_v57  ;;  %v5156_v57 = vld [vmem:[#allocation6_spill] sm:$0xff]  ;;  %v2395_v42 = vmax.f32 %v2393_v36, 1e-30 }
 0x478   : > { %3813 = vrcp.f32 %v1938_v46  ;;  %3449 = vmatpush3.msra.mxu0 %v5152_v30  ;;  %3450 = vmatprep.mubr.msk.f32.mxu0 %vm616_vm2, %v1352_v16  ;;  %v5161_v30 = vld [vmem:[#allocation14_spill] sm:$0xff] }
 0x479   : > { %v3802_v31 = vpop.eup %3801  ;;  %3453 = vmatprep.subr.mxu0 %v5153_v59  ;;  %v2075_v21 = vpop.xlane.xlu0 %2074  ;;  %3451 = vmatmul.mubr.msk.f32.vlgmr.msra.gmra.mxu0 %vm616_vm2, %v1354_v50  ;;  %3815 = vrcp.f32 %v2080_v6 }
 0x47a   : > { %v2079_v51 = vmax.f32 %v2075_v21, 1e-30  ;;  %3454 = vmatpush3.msra.mxu0 %v5153_v59  ;;  %v1493_v25 = vmul.f32 %v3802_v31, %v4704_v44  ;;  %v3804_v3 = vpop.eup %3803  ;;  %v5162_v59 = vld [vmem:[#allocation20_spill] sm:$0xff] }
 0x47b   : > { %3455 = vmatprep.subr.mxu0 %v5154_v49  ;;  %v1634_v22 = vmul.f32 %v3804_v3, %v4667_v0  ;;  %v5158_v0 = vld [vmem:[#allocation12_spill] sm:$0xff] }
 0x47c   : > { %3817 = vrcp.f32 %v2079_v51  ;;  %3456 = vmatpush3.msra.mxu0 %v5154_v49  ;;  %3457 = vmatprep.mubr.msk.f32.mxu0 %vm616_vm2, %v1493_v25 }
 0x47d   : > { %v3806_v48 = vpop.eup %3805  ;;  %3467 = vmatprep.subr.mxu0 %v5155_v18  ;;  %v2214_v54 = vpop.xlane.xlu0 %2213  ;;  %3458 = vmatmul.mubr.msk.f32.vlgmr.msra.gmra.mxu0 %vm616_vm2, %v1495_v4  ;;  %3819 = vrcp.f32 %v2219_v60 }
 0x47e   : > { %v2218_v2 = vmax.f32 %v2214_v54, 1e-30  ;;  %3468 = vmatpush3.msra.mxu0 %v5155_v18  ;;  %v2667_v44 = vpop.xlane.xlu1 %2666  ;;  %v1632_v7 = vmul.f32 %v3806_v48, %v4718_v55  ;;  %v3808_v9 = vpop.eup %3807 }
 0x47f   : > { %3469 = vmatprep.subr.mxu0 %v5156_v57  ;;  %v1810_v17 = vmul.f32 %v3808_v9, %v4696_v45  ;;  %v5160_v45 = vld [vmem:[#allocation19_spill] sm:$0xff] }
 0x480   : > { %3821 = vrcp.f32 %v2218_v2  ;;  %3470 = vmatpush3.msra.mxu0 %v5156_v57  ;;  %3464 = vmatprep.mubr.msk.f32.mxu1 %vm616_vm2, %v1632_v7  ;;  %v581_v7 = vld [vmem:[%s5109_s4 + $0x48] sm:$0xff]  ;;  %v580_v57 = vld [vmem:[%s5109_s4 + $0x40] sm:$0xff]  ;;  %v578_v9 = vld [vmem:[%s5109_s4 + $0x30] sm:$0xff] }
 0x481   : > { %v3810_v27 = vpop.eup %3809  ;;  %3481 = vmatprep.subr.mxu0 %v5157_v40  ;;  %v2526_v23 = vpop.xlane.xlu0 %2525  ;;  %3465 = vmatmul.mubr.msk.f32.vlgmr.msra.gmra.mxu1 %vm616_vm2, %v1634_v22  ;;  %3823 = vrcp.f32 %v2395_v42  ;;  %v579_v22 = vld [vmem:[%s5109_s4 + $0x38] sm:$0xff]  ;;  %v577_v42 = vld [vmem:[%s5109_s4 + $0x28] sm:$0xff] }
 0x482   : > { %3475 = vmatpush3.msra.mxu1 %v5151_v38  ;;  %v2390_v55 = vpop.xlane.xlu1 %2389  ;;  %v1808_v47 = vmul.f32 %v3810_v27, %v4732_v20  ;;  %v3812_v12 = vpop.eup %3811  ;;  %v2669_v38 = vmax.f32 %v2667_v44, 1e-30  ;;  %v2528_v43 = vmax.f32 %v2526_v23, 1e-30  ;;  %v582_v44 = vld [vmem:[%s5109_s4 + $0x50] sm:$0xff]  ;;  %v576_v27 = vld [vmem:[%s5109_s4 + $0x20] sm:$0xff] }
 0x483   : > { %v2394_v11 = vmax.f32 %v2390_v55, 1e-30  ;;  %3476 = vmatprep.subr.mxu1 %v5158_v0  ;;  %v1943_v58 = vmul.f32 %v3812_v12, %v4710_v8 }
 0x484   : > { %3477 = vmatpush3.msra.mxu1 %v5158_v0  ;;  %3471 = vmatprep.mubr.msk.f32.mxu0 %vm616_vm2, %v1808_v47  ;;  %v575_v47 = vld [vmem:[%s5109_s4 + $0x18] sm:$0xff] }
 0x485   : > { %v3814_v26 = vpop.eup %3813  ;;  %3825 = vrcp.f32 %v2394_v11  ;;  %3488 = vmatprep.subr.mxu1 %v5159_v28  ;;  %v2806_v5 = vpop.xlane.xlu0 %2805  ;;  %3472 = vmatmul.mubr.msk.f32.vlgmr.msra.gmra.mxu0 %vm616_vm2, %v1810_v17  ;;  %v574_v11 = vld [vmem:[%s5109_s4 + $0x10] sm:$0xff]  ;;  %v573_v17 = vld [vmem:[%s5109_s4 + $0x8] sm:$0xff] }
 0x486   : > { %3482 = vmatpush3.msra.mxu0 %v5157_v40  ;;  %v1941_v20 = vmul.f32 %v3814_v26, %v4745_v32  ;;  %v3816_v1 = vpop.eup %3815  ;;  %3827 = vrcp.f32 %v2669_v38  ;;  %v2808_v8 = vmax.f32 %v2806_v5, 1e-30  ;;  %v572_v26 = vld [vmem:[%s5109_s4] sm:$0xff] }
 0x487   : > { %3483 = vmatprep.subr.mxu0 %v5160_v45  ;;  %3829 = vrcp.f32 %v2528_v43  ;;  %v2084_v50 = vmul.f32 %v3816_v1, %v4724_v14 }
 0x488   : > { %3484 = vmatpush3.msra.mxu0 %v5160_v45  ;;  %3478 = vmatprep.mubr.msk.f32.mxu1 %vm616_vm2, %v1941_v20 }
 0x489   : > { %v3818_v41 = vpop.eup %3817  ;;  %3495 = vmatprep.subr.mxu0 %v4098_v34  ;;  %v2523_v52 = vpop.xlane.xlu0 %2522  ;;  %3479 = vmatmul.mubr.msk.f32.vlgmr.msra.gmra.mxu1 %vm616_vm2, %v1943_v58 }
 0x48a   : > { %v2664_v46 = vpop.xlane.xlu1 %2663  ;;  %v2527_v16 = vmax.f32 %v2523_v52, 1e-30  ;;  %3489 = vmatpush3.msra.mxu1 %v5159_v28  ;;  %v2082_v6 = vmul.f32 %v3818_v41, %v4758_v19  ;;  %v3820_v53 = vpop.eup %3819 }
 0x48b   : > { %v2668_v32 = vmax.f32 %v2664_v46, 1e-30  ;;  %3490 = vmatprep.subr.mxu1 %v5161_v30  ;;  %v2223_v14 = vmul.f32 %v3820_v53, %v4738_v10 }
 0x48c   : > { %3831 = vrcp.f32 %v2527_v16  ;;  %3491 = vmatpush3.msra.mxu1 %v5161_v30  ;;  %3485 = vmatprep.mubr.msk.f32.mxu0 %vm616_vm2, %v2082_v6 }
 0x48d   : > { %v3822_v31 = vpop.eup %3821  ;;  %3833 = vrcp.f32 %v2668_v32  ;;  %3502 = vmatprep.subr.mxu1 %v5162_v59  ;;  %v2803_v21 = vpop.xlane.xlu0 %2802  ;;  %3486 = vmatmul.mubr.msk.f32.vlgmr.msra.gmra.mxu0 %vm616_vm2, %v2084_v50 }
 0x48e   : > { %v2807_v19 = vmax.f32 %v2803_v21, 1e-30  ;;  %3496 = vmatpush3.msra.mxu0 %v4098_v34  ;;  %v2221_v36 = vmul.f32 %v3822_v31, %v4765_v62  ;;  %3835 = vrcp.f32 %v2808_v8  ;;  %v3824_v51 = vpop.eup %3823  ;;  %v5163_v34 = vld [vmem:[#allocation16_spill] sm:$0xff] }
 0x48f   : > { %3497 = vmatprep.subr.mxu0 %v4103_v35  ;;  %v2399_v10 = vmul.f32 %v3824_v51, %v4751_v56 }
 0x490   : > { %3837 = vrcp.f32 %v2807_v19  ;;  %3498 = vmatpush3.msra.mxu0 %v4103_v35  ;;  %3492 = vmatprep.mubr.msk.f32.mxu1 %vm616_vm2, %v2221_v36 }
 0x491   : > { %3509 = vmatprep.subr.mxu0 %v4817_v24  ;;  %3493 = vmatmul.mubr.msk.f32.vlgmr.msra.gmra.mxu1 %vm616_vm2, %v2223_v14  ;;  %v2675_v60 = vpop.permute.xlu0 %2674 }
 0x492   : > { %v3826_v25 = vpop.eup %3825  ;;  %3503 = vmatpush3.msra.mxu1 %v5162_v59 }
 0x493   : > { %3504 = vmatprep.subr.mxu1 %v5163_v34  ;;  %v2397_v62 = vmul.f32 %v3826_v25, %v4781_v63  ;;  %v3828_v35 = vpop.eup %3827 }
 0x494   : > { %3505 = vmatpush3.msra.mxu1 %v5163_v34  ;;  %v3830_v49 = vpop.eup %3829  ;;  %v2673_v54 = vmul.f32 %v3828_v35, %v4771_v39  ;;  %v587_v39 = vld [vmem:[%s5109_s4 + $0x78] sm:$0xff] }
 0x495   : > { %3499 = vmatprep.mubr.msk.f32.mxu0 %vm616_vm2, %v2397_v62  ;;  %3516 = vmatprep.subr.mxu1 %v4813_v33  ;;  %v2532_v56 = vmul.f32 %v3830_v49, %v4777_v13 }
 0x496   : > { %3500 = vmatmul.mubr.msk.f32.vlgmr.msra.gmra.mxu0 %vm616_vm2, %v2399_v10 }
 0x497   : > { %3510 = vmatpush3.msra.mxu0 %v4817_v24  ;;  %v2814_v24 = vpop.permute.xlu1 %2813 }
 0x498   : > { %3511 = vmatprep.subr.mxu0 %v2675_v60 }
 0x499   : > { %v3832_v4 = vpop.eup %3831  ;;  %3512 = vmatpush3.msra.mxu0 %v2675_v60 }
 0x49a   : > { %v3834_v3 = vpop.eup %3833  ;;  %v2530_v63 = vmul.f32 %v3832_v4, %v4795_v37  ;;  %3523 = vmatprep.subr.mxu0 %v587_v39 }
 0x49b   : > { %v2671_v48 = vmul.f32 %v3834_v3, %v4799_v15  ;;  %v3836_v18 = vpop.eup %3835  ;;  %v586_v15 = vld [vmem:[%s5109_s4 + $0x70] sm:$0xff] }
 0x49c   : > { %3506 = vmatprep.mubr.msk.f32.mxu1 %vm616_vm2, %v2530_v63  ;;  %v2812_v13 = vmul.f32 %v3836_v18, %v4789_v61  ;;  %v585_v61 = vld [vmem:[%s5109_s4 + $0x68] sm:$0xff] }
 0x49d   : > { %v3838_v2 = vpop.eup %3837  ;;  %3513 = vmatprep.mubr.msk.f32.mxu0 %vm616_vm2, %v2671_v48  ;;  %3507 = vmatmul.mubr.msk.f32.vlgmr.msra.gmra.mxu1 %vm616_vm2, %v2532_v56 }
 0x49e   : > { %3514 = vmatmul.mubr.msk.f32.vlgmr.msra.gmra.mxu0 %vm616_vm2, %v2673_v54  ;;  %3517 = vmatpush3.msra.mxu1 %v4813_v33  ;;  %v2810_v37 = vmul.f32 %v3838_v2, %v4807_v29  ;;  %v584_v29 = vld [vmem:[%s5109_s4 + $0x60] sm:$0xff]  ;;  %v583_v33 = vld [vmem:[%s5109_s4 + $0x58] sm:$0xff] }
 0x49f   : > { %3518 = vmatprep.subr.mxu1 %v2814_v24  ;;  %3524 = vmatpush3.msra.mxu0 %v587_v39 }
 0x4a0   : > { %3519 = vmatpush3.msra.mxu1 %v2814_v24  ;;  %3520 = vmatprep.mubr.msk.f32.mxu1 %vm616_vm2, %v2810_v37 }
 0x4a1   : > { %3521 = vmatmul.mubr.msk.f32.vlgmr.msra.gmra.mxu1 %vm616_vm2, %v2812_v13  ;;  %3525 = vmatprep.subr.mxu0 %v586_v15  ;;  %vm1160_vm2 = vcmask 785408  }
 0x4a2   : > { %3526 = vmatpush3.msra.mxu0 %v586_v15 }
 0x4a3   : > { %3527 = vmatprep.subr.mxu0 %v585_v61 }
 0x4a4   : > { %3528 = vmatpush3.msra.mxu0 %v585_v61 }
 0x4a5   : > { %3529 = vmatprep.subr.mxu0 %v584_v29 }
 0x4a6   : > { %3530 = vmatpush3.msra.mxu0 %v584_v29 }
 0x4a7   : > { %3531 = vmatprep.subr.mxu0 %v583_v33 }
 0x4a8   : > { %3532 = vmatpush3.msra.mxu0 %v583_v33 }
 0x4a9   : > { %3533 = vmatprep.subr.mxu0 %v582_v44 }
 0x4aa   : > { %3534 = vmatpush3.msra.mxu0 %v582_v44 }
 0x4ab   : > { %3535 = vmatprep.subr.mxu0 %v581_v7 }
 0x4ac   : > { %3536 = vmatpush3.msra.mxu0 %v581_v7 }
 0x4ad   : > { %3537 = vmatprep.subr.mxu0 %v580_v57 }
 0x4ae   : > { %3538 = vmatpush3.msra.mxu0 %v580_v57 }
 0x4af   : > { %3539 = vmatprep.subr.mxu0 %v579_v22 }
 0x4b0   : > { %3540 = vmatpush3.msra.mxu0 %v579_v22 }
 0x4b1   : > { %3541 = vmatprep.subr.mxu0 %v578_v9 }
 0x4b2   : > { %3542 = vmatpush3.msra.mxu0 %v578_v9 }
 0x4b3   : > { %3543 = vmatprep.subr.mxu0 %v577_v42 }
 0x4b4   : > { %3544 = vmatpush3.msra.mxu0 %v577_v42 }
 0x4b5   : > { %3545 = vmatprep.subr.mxu0 %v576_v27 }
 0x4b6   : > { %3546 = vmatpush3.msra.mxu0 %v576_v27 }
 0x4b7   : > { %3547 = vmatprep.subr.mxu0 %v575_v47 }
 0x4b8   : > { %3548 = vmatpush3.msra.mxu0 %v575_v47 }
 0x4b9   : > { %3549 = vmatprep.subr.mxu0 %v574_v11 }
 0x4ba   : > { %3550 = vmatpush3.msra.mxu0 %v574_v11 }
 0x4bb   : > { %3551 = vmatprep.subr.mxu0 %v573_v17 }
 0x4bc   : > { %3552 = vmatpush3.msra.mxu0 %v573_v17 }
 0x4bd   : > { %3553 = vmatprep.subr.mxu0 %v572_v26 }
 0x4be   : > { %3554 = vmatpush3.msra.mxu0 %v572_v26 }
 0x4f8   : > { %v3431_v40 = vpop.f32.mrf.mxu0 }
 0x4fa   : > { %v987_v23 = vpop.f32.mrf.mxu0 }
 0x4fb   : > { %v3650_v55 = vpack.i.bf16 %v3431_v40, %v987_v23 }
 0x4fd   : > { %v4975_v0 = vpop.f32.mrf.mxu1  ;;  %3651 = vrot.lane.b32.xlu1 %v3650_v55, %s3902_s26  ;;  %v3438_v28 = vpop.f32.mrf.mxu0 }
 0x4ff   : > { %v4981_v12 = vpop.f32.mrf.mxu1  ;;  %v1122_v43 = vpop.f32.mrf.mxu0 }
 0x500   : > { %v3660_v45 = vpack.i.bf16 %v3438_v28, %v1122_v43 }
 0x502   : > { %v3424_v5 = vpop.f32.mrf.mxu1 }
 0x504   : > { %v852_v38 = vpop.f32.mrf.mxu1 }
 0x505   : > { %v3655_v20 = vpack.i.bf16 %v3424_v5, %v852_v38 }
 0x507   : > { %3656 = vrot.lane.b32.xlu0 %v3655_v20, %s3903_s11 }
 0x50b   : > { %3661 = vrot.lane.b32.xlu0 %v3660_v45, %s3901_s10 }
 0x535   : > { %v4988_v58 = vpop.f32.mrf.mxu0 }
 0x537   : > { %v4990_v1 = vpop.f32.mrf.mxu0 }
 0x539   : > { %v3452_v41 = vpop.f32.mrf.mxu0 }
 0x53b   : > { %v1435_v52 = vpop.f32.mrf.mxu0 }
 0x53c   : > { %v3670_v50 = vpack.i.bf16 %v3452_v41, %v1435_v52 }
 0x53d   : > { %v3459_v46 = vpop.f32.mrf.mxu0 }
 0x53f   : > { %v1574_v8 = vpop.f32.mrf.mxu0 }
 0x540   : > { %v3680_v14 = vpack.i.bf16 %v3459_v46, %v1574_v8 }
 0x541   : > { %v3466_v16 = vpop.f32.mrf.mxu1 }
 0x543   : > { %v1713_v32 = vpop.f32.mrf.mxu1 }
 0x544   : > { %v3665_v6 = vpack.i.bf16 %v3466_v16, %v1713_v32 }
 0x545   : > { %v4993_v30 = vpop.f32.mrf.mxu0 }
 0x546   : > { %3666 = vrot.lane.b32.xlu1 %v3665_v6, %s3901_s10 }
 0x547   : > { %v4996_v31 = vpop.f32.mrf.mxu0 }
 0x549   : > { %v3480_v53 = vpop.f32.mrf.mxu1 }
 0x54a   : > { %3671 = vrot.lane.b32.xlu1 %v3670_v50, %s3903_s11 }
 0x54b   : > { %v2024_v59 = vpop.f32.mrf.mxu1 }
 0x54c   : > { %v3675_v21 = vpack.i.bf16 %v3480_v53, %v2024_v59 }
 0x54d   : > { %v3487_v19 = vpop.f32.mrf.mxu0 }
 0x54e   : > { %3676 = vrot.lane.b32.xlu0 %v3675_v21, %s3903_s11 }
 0x54f   : > { %v2163_v36 = vpop.f32.mrf.mxu0 }
 0x550   : > { %v3690_v51 = vpack.i.bf16 %v3487_v19, %v2163_v36 }
 0x551   : > { %v3494_v25 = vpop.f32.mrf.mxu1 }
 0x552   : > { %3681 = vrot.lane.b32.xlu0 %v3680_v14, %s3902_s26  ;;  %3691 = vrot.lane.b32.xlu1 %v3690_v51, %s3902_s26 }
 0x553   : > { %v2302_v34 = vpop.f32.mrf.mxu1 }
 0x554   : > { %v3685_v62 = vpack.i.bf16 %v3494_v25, %v2302_v34 }
 0x556   : > { %3686 = vrot.lane.b32.xlu0 %v3685_v62, %s3901_s10  ;;  %v5002_v10 = vpop.f32.mrf.mxu0 }
 0x558   : > { %v5004_v35 = vpop.f32.mrf.mxu0 }
 0x55d   : > { %v3508_v60 = vpop.f32.mrf.mxu1 }
 0x55e   : > { %v3515_v49 = vpop.f32.mrf.mxu0 }
 0x55f   : > { %v2613_v4 = vpop.f32.mrf.mxu1 }
 0x560   : > { %v3695_v3 = vpack.i.bf16 %v3508_v60, %v2613_v4  ;;  %v2752_v63 = vpop.f32.mrf.mxu0 }
 0x561   : > { %v3700_v48 = vpack.i.bf16 %v3515_v49, %v2752_v63  ;;  %v3522_v56 = vpop.f32.mrf.mxu1 }
 0x562   : > { %3696 = vrot.lane.b32.xlu1 %v3695_v3, %s3903_s11 }
 0x563   : > { %3701 = vrot.lane.b32.xlu0 %v3700_v48, %s3902_s26  ;;  %v2891_v18 = vpop.f32.mrf.mxu1 }
 0x564   : > { %v3705_v54 = vpack.i.bf16 %v3522_v56, %v2891_v18 }
 0x566   : > { %3706 = vrot.lane.b32.xlu1 %v3705_v54, %s3901_s10 }
 0x56f   : > { %v3652_v24 = vpop.permute.xlu1 %3651 }
 0x570   : > { %v3654_v61 = vunpack.i.h.bf16 %v3652_v24  ;;  %v3653_v29 = vunpack.i.l.bf16 %v3652_v24 }
 0x579   : > { %v3657_v2 = vpop.permute.xlu0 %3656 }
 0x57a   : > { %v3659_v37 = vunpack.i.h.bf16 %v3657_v2  ;;  %v3658_v13 = vunpack.i.l.bf16 %v3657_v2 }
 0x57c   : > { %v1156_v39 = vsel %vm289_vm0, %v4975_v0, %v3659_v37  ;;  %v1155_v15 = vsel %vm289_vm0, %v4981_v12, %v3658_v13 }
 0x57d   : > { %v3662_v33 = vpop.permute.xlu0 %3661  ;;  %v1158_v57 = vsel %vm1157_vm1, %v1155_v15, %v3653_v29  ;;  %v1159_v22 = vsel %vm1157_vm1, %v1156_v39, %v3654_v61 }
 0x57e   : > { %v3664_v44 = vunpack.i.h.bf16 %v3662_v33  ;;  %v3663_v7 = vunpack.i.l.bf16 %v3662_v33 }
 0x580   : > { %v1161_v9 = vsel %vm1160_vm2, %v1158_v57, %v3663_v7  ;;  %v1162_v42 = vsel %vm1160_vm2, %v1159_v22, %v3664_v44 }
 0x581   : > { %3555 = vmatprep.mubr.f32.mxu0 %v1161_v9 }
 0x582   : > { %3556 = vmatmul.mubr.f32.vlgmr.msra.gmra.mxu0 %v1162_v42 }
 0x5b8   : > { %v3667_v27 = vpop.permute.xlu1 %3666 }
 0x5b9   : > { %v3669_v17 = vunpack.i.h.bf16 %v3667_v27  ;;  %v3668_v5 = vunpack.i.l.bf16 %v3667_v27 }
 0x5bc   : > { %v3672_v40 = vpop.permute.xlu1 %3671 }
 0x5bd   : > { %v3674_v55 = vunpack.i.h.bf16 %v3672_v40  ;;  %v3673_v47 = vunpack.i.l.bf16 %v3672_v40 }
 0x5bf   : > { %v1746_v20 = vsel %vm289_vm0, %v4990_v1, %v3673_v47  ;;  %v1747_v43 = vsel %vm289_vm0, %v4988_v58, %v3674_v55 }
 0x5c0   : > { %v3677_v23 = vpop.permute.xlu0 %3676 }
 0x5c1   : > { %v3678_v12 = vunpack.i.l.bf16 %v3677_v23  ;;  %v3679_v45 = vunpack.i.h.bf16 %v3677_v23 }
 0x5c3   : > { %v2335_v1 = vsel %vm289_vm0, %v4996_v31, %v3678_v12  ;;  %v2336_v59 = vsel %vm289_vm0, %v4993_v30, %v3679_v45 }
 0x5c4   : > { %v3682_v11 = vpop.permute.xlu0 %3681  ;;  %v3692_v0 = vpop.permute.xlu1 %3691 }
 0x5c5   : > { %v3684_v26 = vunpack.i.h.bf16 %v3682_v11  ;;  %v3683_v28 = vunpack.i.l.bf16 %v3682_v11  ;;  %v3693_v38 = vunpack.i.l.bf16 %v3692_v0  ;;  %v3694_v46 = vunpack.i.h.bf16 %v3692_v0 }
 0x5c7   : > { %v1748_v41 = vsel %vm1157_vm1, %v1746_v20, %v3683_v28  ;;  %v1749_v52 = vsel %vm1157_vm1, %v1747_v43, %v3684_v26  ;;  %v2337_v58 = vsel %vm1157_vm1, %v2335_v1, %v3693_v38  ;;  %v2338_v21 = vsel %vm1157_vm1, %v2336_v59, %v3694_v46 }
 0x5c8   : > { %v3687_v16 = vpop.permute.xlu0 %3686  ;;  %v1750_v32 = vsel %vm1160_vm2, %v1748_v41, %v3668_v5  ;;  %v1751_v6 = vsel %vm1160_vm2, %v1749_v52, %v3669_v17 }
 0x5c9   : > { %v3689_v8 = vunpack.i.h.bf16 %v3687_v16  ;;  %v3688_v50 = vunpack.i.l.bf16 %v3687_v16  ;;  %3558 = vmatprep.mubr.f32.mxu0 %v1750_v32 }
 0x5ca   : > { %3559 = vmatmul.mubr.f32.gmra.mxu0 %v1751_v6 }
 0x5cb   : > { %v2339_v53 = vsel %vm1160_vm2, %v2337_v58, %v3688_v50  ;;  %v2340_v19 = vsel %vm1160_vm2, %v2338_v21, %v3689_v8 }
 0x5cc   : > { %3561 = vmatprep.mubr.f32.mxu0 %v2339_v53 }
 0x5ce   : > { %3562 = vmatmul.mubr.f32.gmra.mxu0 %v2340_v19 }
 0x5d4   : > { %v3697_v36 = vpop.permute.xlu1 %3696 }
 0x5d5   : > { %v3702_v14 = vpop.permute.xlu0 %3701  ;;  %v3699_v51 = vunpack.i.h.bf16 %v3697_v36  ;;  %v3698_v25 = vunpack.i.l.bf16 %v3697_v36 }
 0x5d6   : > { %v3704_v34 = vunpack.i.h.bf16 %v3702_v14  ;;  %v3703_v31 = vunpack.i.l.bf16 %v3702_v14 }
 0x5d7   : > { %v2924_v62 = vsel %vm289_vm0, %v5004_v35, %v3698_v25  ;;  %v2925_v60 = vsel %vm289_vm0, %v5002_v10, %v3699_v51  ;;  %v3217_v35 = vld [vmem:[%s5110_s5] ss:$0 sm:$0xff] }
 0x5d8   : > { %v3707_v49 = vpop.permute.xlu1 %3706  ;;  %v2926_v3 = vsel %vm1157_vm1, %v2924_v62, %v3703_v31  ;;  %v2927_v63 = vsel %vm1157_vm1, %v2925_v60, %v3704_v34 }
 0x5d9   : > { %v3709_v30 = vunpack.i.h.bf16 %v3707_v49  ;;  %v3708_v4 = vunpack.i.l.bf16 %v3707_v49 }
 0x5db   : > { %v2928_v48 = vsel %vm1160_vm2, %v2926_v3, %v3708_v4  ;;  %v2929_v56 = vsel %vm1160_vm2, %v2927_v63, %v3709_v30 }
 0x5dc   : > { %3564 = vmatprep.mubr.f32.mxu0 %v2928_v48 }
 0x5dd   : > { %3565 = vmatmul.mubr.f32.gmra.mxu0 %v2929_v56 }
 0x642   : > { %v3557_v18 = vpop.f32.mrf.mxu0 }
 0x643   : > { %v3009_v42 = vadd.f32 %v3557_v18, %v3217_v35 }
 0x644   : > { %v3003_v54 = vpop.f32.mrf.mxu0 }
 0x645   : > { %v3004_v40 = vadd.f32 %v3217_v35, %v3003_v54 }
 0x68a   : > { %v3560_v10 = vpop.f32.mrf.mxu0 }
 0x68b   : > { %v3019_v2 = vadd.f32 %v3560_v10, %v3217_v35 }
 0x68c   : > { %v3013_v24 = vpop.f32.mrf.mxu0 }
 0x68d   : > { %v3014_v37 = vadd.f32 %v3217_v35, %v3013_v24  ;;  %3046 = vrot.lane.b32.xlu1 %v3019_v2, %s3903_s11 }
 0x68e   : > { %v3563_v13 = vpop.f32.mrf.mxu0 }
 0x68f   : > { %v3029_v39 = vadd.f32 %v3563_v13, %v3217_v35  ;;  %3044 = vrot.lane.b32.xlu0 %v3014_v37, %s3903_s11  ;;  %s263_s11 = scalar_lea.vmem [#allocation2], %s3165_s18 }
 0x690   : > { %v3023_v15 = vpop.f32.mrf.mxu0  ;;  %s3087_s19 = sshll.u32 %s263_s11, 4  ;;  %s5054_s19 = int_to_ptr.vmem [resolvable:$true] %s3087_s19 }
 0x691   : > { %v3024_v61 = vadd.f32 %v3217_v35, %v3023_v15  ;;  %3054 = vrot.lane.b32.xlu1 %v3029_v39, %s3902_s26  ;;  %s3839_s29 = scalar_lea.vmem %s5054_s19, 256  ;;  %p3846_p1 = scmp.lt.s32.totalorder %s5054_s19, %s3844_s12 }
 0x692   : > { %p3840_p12 = scmp.ne.s32.totalorder %s5054_s19, %s3839_s29  ;;  %p3847_p2 = scmp.lt.s32.totalorder %s3845_s13, %s3839_s29 }
 0x693   : > { %3052 = vrot.lane.b32.xlu0 %v3024_v61, %s3902_s26 }
 0x694   : > { %p3841_p13 = pnand %p3840_p12, %p3987_p5  ;;  %p3848_p3 = por %p3847_p2, %p3846_p1 }
 0x696   : > { %p3842_p0 = pneg %p3841_p13 }
 0x698   : > { %p3849_p4 = pnand %p3848_p3, %p3842_p0 }
 0x69d   : > { %v3566_v29 = vpop.f32.mrf.mxu0 }
 0x69e   : > { %v3039_v33 = vadd.f32 %v3566_v29, %v3217_v35 }
 0x69f   : > { %v3033_v44 = vpop.f32.mrf.mxu0 }
 0x6a0   : > { %v3034_v7 = vadd.f32 %v3217_v35, %v3033_v44  ;;  %3062 = vrot.lane.b32.xlu1 %v3039_v33, %s3901_s10 }
 0x6a2   : > { %3060 = vrot.lane.b32.xlu0 %v3034_v7, %s3901_s10 }
 0x6ff   : > { %v3047_v57 = vpop.permute.xlu1 %3046 }
 0x700   : > { %v3067_v23 = vsel %vm289_vm0, %v3009_v42, %v3047_v57 }
 0x701   : > { %v3045_v22 = vpop.permute.xlu0 %3044 }
 0x702   : > { %v3066_v11 = vsel %vm289_vm0, %v3004_v40, %v3045_v22 }
 0x703   : > { %v3055_v9 = vpop.permute.xlu1 %3054 }
 0x704   : > { %v3069_v55 = vsel %vm1157_vm1, %v3067_v23, %v3055_v9 }
 0x705   : > { %v3053_v27 = vpop.permute.xlu0 %3052 }
 0x706   : > { %v3068_v17 = vsel %vm1157_vm1, %v3066_v11, %v3053_v27 }
 0x712   : > { %v3063_v47 = vpop.permute.xlu1 %3062 }
 0x713   : > { %v3071_v0 = vsel %vm1160_vm2, %v3069_v55, %v3063_v47 }
 0x714   : > { %3073 = vst [vmem:[%s263_s11 + $0x8] sm:$0xff] %v3071_v0  ;;  %v3061_v12 = vpop.permute.xlu0 %3060 }
 0x715   : > { %v3070_v26 = vsel %vm1160_vm2, %v3068_v17, %v3061_v12 }
 0x716   : > { %3072 = vst [vmem:[%s263_s11] sm:$0xff] %v3070_v26 }
 0x717   : > { %3852 = shalt.err (!%p3849_p4)
}
 0x718   : > { %s3853_s14 = scalar_lea.hbm %s5061_s25, 256  ;;  %s3857_s17 = scalar_lea.hbm %s5111_s6, 512 }
 0x719   : > { %p3854_p7 = scmp.ne.s32.totalorder %s5061_s25, %s3853_s14  ;;  %p3858_p10 = scmp.lt.s32.totalorder %s5061_s25, %s5111_s6 }
 0x71a   : > { %p3859_p11 = scmp.lt.s32.totalorder %s3857_s17, %s3853_s14 }
 0x71b   : > { %p3855_p8 = pnand %p3854_p7, %p3987_p5 }
 0x71c   : > { %p3860_p12 = por %p3859_p11, %p3858_p10 }
 0x71d   : > { %p3856_p9 = pneg %p3855_p8 }
 0x71f   : > { %p3861_p13 = pnand %p3860_p12, %p3856_p9 }
 0x721   : > { %3864 = shalt.err (!%p3861_p13)
}
 0x722   : > { %s3911_s20 = smov 128   ;;  %s3912_s10 = smov 256  }
 0x723   : > { %s3913_s26 = smov 8  }
 0x724   : > { %3567 = dma.vmem_to_hbm [thread:$0]  (%p3987_p5), %s5054_s19, 256, %s5061_s25, %s5065_s28, %s3911_s20, %s3912_s10, %s3913_s26  }
 0x725 PF: > { %p3573_p0 = scmp.ge.s32.totalorder %s3899_s24, 2  ;;  %s3102_s29 = sand.u32 1, %s3887_s21  }
 0x726   : > { %s3103_s9 = scalar_lea.sflag [#allocation3], %s3102_s29 }
 0x727   : > { %p3570_p1 = pnand %p3573_p0, %p3991_p6 }
 0x729   : > { %p3571_p2 = pneg %p3570_p1 }
 0x72b   : > { %3882 = dma.done.wait (%p3571_p2), %s3103_s9, 256  }
 0x72c   : > { %3884 = vsyncadd (%p3571_p2), %s3103_s9, 4294967040  ;;  %p16_p3 = scmp.ge.s32.totalorder %s3974_s27, 4   ;;  %s5164_s21 = smov %s3891_s22 }
 0x72d   : > { %s5165_s22 = smov %s3895_s23  ;;  %s5166_s23 = smov %s3985_s30 }
 0x72e   : > { %s5167_s24 = smov %s3974_s27  ;;  %18 = sbr.rel (!%p16_p3) target bundleno = 3 (0x3), region = 85 }
 0x733   :  { %3108 = vsyncpa [#allocation3], 1 }
 0x734   :  { %3110 = vsyncpa [#allocation3 + $0x1], 1 }

</bundles_post_ra>
